<compile_context>
chip_gen: v7x
topology: tpu7x:2x2x1
jax: 0.10.0
libtpu: 0.0.40
codegen_flags: <defaults>
</compile_context>

<pallas_src>
import functools
import math

import jax
import jax.numpy as jnp
from jax.experimental import pallas as pl
from jax.experimental.pallas import tpu as pltpu


def _tile_over_batch(w, bt):
    """(H, ...) -> (bt*H, ...) by repeating along a new leading axis (no XLU work)."""
    if bt == 1:
        return w
    return jnp.broadcast_to(w[None], (bt,) + w.shape).reshape(
        (bt * w.shape[0],) + w.shape[1:])


def vit_block_kernel(
    x_ref,        # (Bt, L, E)  f32   batch tile
    wqh_ref,      # (H, E, dh)  bf16  head-major, 1/sqrt(dh) pre-folded
    wkh_ref,      # (H, E, dh)  bf16
    wvh_ref,      # (H, E, dh)  bf16
    bqh_ref,      # (H, 1, dh)  f32   scale pre-folded
    bkh_ref,      # (H, 1, dh)  f32
    bvh_ref,      # (H, 1, dh)  f32
    woh_ref,      # (H, dh, E)  bf16  out_proj, head-major
    bo_ref,       # (1, E)      f32
    ln1_g_ref,    # (1, E)      f32
    ln1_b_ref,    # (1, E)      f32
    w1_ref,       # (E, M)      bf16  mlp linear1 weight.T
    b1_ref,       # (1, M)      f32
    w2_ref,       # (M, E)      bf16  mlp linear2 weight.T
    b2_ref,       # (1, E)      f32
    ln2_g_ref,    # (1, E)      f32
    ln2_b_ref,    # (1, E)      f32
    o_ref,        # (Bt, L, E)
    *,
    num_heads: int,
):
    Bt, L, E = x_ref.shape
    H = num_heads
    dh = E // H
    Z = Bt * H          # joint (batch, head) attention axis
    T = Bt * L          # flattened token count for LN / MLP / residual
    eps = 1e-5

    x = x_ref[...]                                   # (Bt, L, E) f32
    xf = x.reshape(T, E)                             # residual stream, f32
    xc = x.astype(jnp.bfloat16)

    # ---- q / k / v projections: leading-batch 3-D einsums, no head relayout ----
    xz = jnp.broadcast_to(xc[:, None], (Bt, H, L, E)).reshape(Z, L, E)   # bf16
    wq_z = _tile_over_batch(wqh_ref[...], Bt)        # (Z, E, dh) bf16
    wk_z = _tile_over_batch(wkh_ref[...], Bt)
    wv_z = _tile_over_batch(wvh_ref[...], Bt)

    q = jnp.einsum('zle,zed->zld', xz, wq_z,
                   preferred_element_type=jnp.float32) + _tile_over_batch(bqh_ref[...], Bt)
    k = jnp.einsum('zle,zed->zld', xz, wk_z,
                   preferred_element_type=jnp.float32) + _tile_over_batch(bkh_ref[...], Bt)
    v = jnp.einsum('zle,zed->zld', xz, wv_z,
                   preferred_element_type=jnp.float32) + _tile_over_batch(bvh_ref[...], Bt)

    # ---- attention (softmax normalization deferred past the p@v matmul) -------
    s = jnp.einsum('zqd,zkd->zqk', q.astype(jnp.bfloat16), k.astype(jnp.bfloat16),
                   preferred_element_type=jnp.float32)                   # (Z, L, L) f32
    m = jnp.max(s, axis=-1, keepdims=True)
    p = jnp.exp((s - m).astype(jnp.bfloat16))                            # bf16 exp (EUP)
    l = jnp.sum(p.astype(jnp.float32), axis=-1, keepdims=True)           # f32 row sums
    ctx = jnp.einsum('zqk,zkd->zqd', p, v.astype(jnp.bfloat16),
                     preferred_element_type=jnp.float32)                 # (Z, L, dh) f32
    ctx = ctx * pl.reciprocal(l, approx=True)

    # ---- output projection: per-head matmul then sum over heads (VPU adds) ----
    attn_z = jnp.einsum('zld,zde->zle', ctx.astype(jnp.bfloat16),
                        _tile_over_batch(woh_ref[...], Bt),
                        preferred_element_type=jnp.float32)              # (Z, L, E)
    attn4 = attn_z.reshape(Bt, H, L, E)
    attn = attn4[:, 0]
    for h in range(1, H):                                                # static unroll
        attn = attn + attn4[:, h]
    attn = attn.reshape(T, E) + bo_ref[...]                              # (T, E) f32

    # ---- residual + LayerNorm 1 (f32) ------------------------------------------
    x1 = xf + attn
    mu1 = jnp.mean(x1, axis=-1, keepdims=True)
    var1 = jnp.mean(jnp.square(x1 - mu1), axis=-1, keepdims=True)
    x1n = (x1 - mu1) * jax.lax.rsqrt(var1 + eps) * ln1_g_ref[...] + ln1_b_ref[...]

    # ---- MLP: Linear -> ReLU -> [Dropout: identity] -> Linear -------------------
    h1 = jnp.dot(x1n.astype(jnp.bfloat16), w1_ref[...],
                 preferred_element_type=jnp.float32) + b1_ref[...]       # (T, M)
    h1 = jnp.maximum(h1, 0.0)
    mlp = jnp.dot(h1.astype(jnp.bfloat16), w2_ref[...],
                  preferred_element_type=jnp.float32) + b2_ref[...]      # (T, E)

    # ---- residual + LayerNorm 2 (f32) -------------------------------------------
    x2 = x1n + mlp
    mu2 = jnp.mean(x2, axis=-1, keepdims=True)
    var2 = jnp.mean(jnp.square(x2 - mu2), axis=-1, keepdims=True)
    x2n = (x2 - mu2) * jax.lax.rsqrt(var2 + eps) * ln2_g_ref[...] + ln2_b_ref[...]

    o_ref[...] = x2n.reshape(Bt, L, E).astype(o_ref.dtype)


def vit_block(x, params, *, num_heads, batch_tile=None, batch_first=False,
              compute_dtype=jnp.bfloat16, out_dtype=jnp.float32):
    """ViT block forward.

    x: (N, L, E) if batch_first else (L, N, E) (PyTorch MultiheadAttention default).
    Keeping batch-first end-to-end avoids the wrapper HBM transposes entirely.
    """
    if not batch_first:
        x = jnp.transpose(x, (1, 0, 2))              # one-time HBM relayout
    N, L, E = x.shape
    H = num_heads
    assert E % H == 0
    dh = E // H
    (w_in, b_in, w_out, b_out, ln1_g, ln1_b,
     w1, b1, w2, b2, ln2_g, ln2_b) = params
    M = w1.shape[0]
    scale = 1.0 / math.sqrt(dh)

    # ---- one-time HBM-side weight relayout: head-major, pre-transposed ---------
    def head_major(w):   # PyTorch (E_out, E_in) -> (H, E_in, dh)
        return jnp.transpose(w.reshape(H, dh, E), (0, 2, 1))

    wq, wk, wv = w_in[0 * E:1 * E], w_in[1 * E:2 * E], w_in[2 * E:3 * E]
    b_in_flat = b_in.reshape(3 * E)
    bq, bk, bv = b_in_flat[0 * E:1 * E], b_in_flat[1 * E:2 * E], b_in_flat[2 * E:3 * E]

    wqh = (head_major(wq) * scale).astype(compute_dtype)        # fold 1/sqrt(dh)
    wkh = head_major(wk).astype(compute_dtype)
    wvh = head_major(wv).astype(compute_dtype)
    bqh = (bq * scale).reshape(H, 1, dh).astype(jnp.float32)
    bkh = bk.reshape(H, 1, dh).astype(jnp.float32)
    bvh = bv.reshape(H, 1, dh).astype(jnp.float32)
    woh = jnp.transpose(w_out).reshape(H, dh, E).astype(compute_dtype)
    bo = b_out.reshape(1, E).astype(jnp.float32)
    w1_t = jnp.transpose(w1).astype(compute_dtype)               # (E, M)
    b1_r = b1.reshape(1, M).astype(jnp.float32)
    w2_t = jnp.transpose(w2).astype(compute_dtype)               # (M, E)
    b2_r = b2.reshape(1, E).astype(jnp.float32)
    g1 = ln1_g.reshape(1, E).astype(jnp.float32)
    be1 = ln1_b.reshape(1, E).astype(jnp.float32)
    g2 = ln2_g.reshape(1, E).astype(jnp.float32)
    be2 = ln2_b.reshape(1, E).astype(jnp.float32)

    # ---- batch tiling: amortize grid-step overhead, fill MXU rows --------------
    if batch_tile is None:
        budget = 2 * 1024 * 1024        # f32 activation-block budget per step
        batch_tile = 1
        for bt in range(1, N + 1):
            if N % bt == 0 and bt <= 8 and bt * L * E * 4 <= budget:
                batch_tile = bt
    assert N % batch_tile == 0
    Bt = batch_tile
    grid = (N // Bt,)

    def full_spec(arr):
        nd = arr.ndim
        return pl.BlockSpec(arr.shape, lambda b, _nd=nd: (0,) * _nd)

    kernel = functools.partial(vit_block_kernel, num_heads=H)

    tokens = N * L
    weight_bytes = sum(int(a.size) * a.dtype.itemsize
                       for a in (wqh, wkh, wvh, woh, w1_t, w2_t))
    flops = 2 * tokens * (4 * E * E + 2 * E * M) + 4 * N * H * L * L * dh
    cost = pl.CostEstimate(
        flops=int(flops),
        transcendentals=int(N * H * L * L + N * H * L + 4 * tokens),
        bytes_accessed=int(tokens * E * 4 * 2 + weight_bytes))

    out = pl.pallas_call(
        kernel,
        out_shape=jax.ShapeDtypeStruct((N, L, E), out_dtype),
        grid=grid,
        in_specs=[
            pl.BlockSpec((Bt, L, E), lambda b: (b, 0, 0)),
            full_spec(wqh), full_spec(wkh), full_spec(wvh),
            full_spec(bqh), full_spec(bkh), full_spec(bvh),
            full_spec(woh), full_spec(bo),
            full_spec(g1), full_spec(be1),
            full_spec(w1_t), full_spec(b1_r),
            full_spec(w2_t), full_spec(b2_r),
            full_spec(g2), full_spec(be2),
        ],
        out_specs=pl.BlockSpec((Bt, L, E), lambda b: (b, 0, 0)),
        compiler_params=pltpu.CompilerParams(
            dimension_semantics=("parallel",),        # batch tiles independent
            vmem_limit_bytes=64 * 1024 * 1024),
        cost_estimate=cost,
    )(x, wqh, wkh, wvh, bqh, bkh, bvh, woh, bo, g1, be1,
      w1_t, b1_r, w2_t, b2_r, g2, be2)

    if not batch_first:
        out = jnp.transpose(out, (1, 0, 2))
    return out


def init_params(key, dim, mlp_dim):
    ks = jax.random.split(key, 8)
    s_in = 1.0 / math.sqrt(dim)
    s_mlp = 1.0 / math.sqrt(mlp_dim)
    w_in = jax.random.uniform(ks[0], (3 * dim, dim), jnp.float32, -s_in, s_in)
    b_in = jax.random.uniform(ks[1], (3 * dim,), jnp.float32, -s_in, s_in)
    w_out = jax.random.uniform(ks[2], (dim, dim), jnp.float32, -s_in, s_in)
    b_out = jax.random.uniform(ks[3], (dim,), jnp.float32, -s_in, s_in)
    ln1_g = jnp.ones((dim,), jnp.float32)
    ln1_b = jnp.zeros((dim,), jnp.float32)
    w1 = jax.random.uniform(ks[4], (mlp_dim, dim), jnp.float32, -s_in, s_in)
    b1 = jax.random.uniform(ks[5], (mlp_dim,), jnp.float32, -s_in, s_in)
    w2 = jax.random.uniform(ks[6], (dim, mlp_dim), jnp.float32, -s_mlp, s_mlp)
    b2 = jax.random.uniform(ks[7], (dim,), jnp.float32, -s_mlp, s_mlp)
    ln2_g = jnp.ones((dim,), jnp.float32)
    ln2_b = jnp.zeros((dim,), jnp.float32)
    return (w_in, b_in, w_out, b_out, ln1_g, ln1_b,
            w1, b1, w2, b2, ln2_g, ln2_b)


if __name__ == "__main__":
    # Small shapes consistent with the module: batch=2, seq=8, dim=32, heads=4, mlp=64.
    # Activations are kept batch-first end-to-end (no wrapper HBM transposes).
    N, L, E, H, M = 2, 8, 32, 4, 64
    key = jax.random.PRNGKey(0)
    kx, kp = jax.random.split(key)
    x = jax.random.normal(kx, (N, L, E), jnp.float32)     # (batch, seq, dim)
    params = init_params(kp, E, M)

    out = vit_block(x, params, num_heads=H, batch_first=True)
    jax.block_until_ready(out)
    assert out.shape == (N, L, E)
    assert bool(jnp.all(jnp.isfinite(out)))
    print("KERNEL_OK")
</pallas_src>

<mosaic_0001>
module attributes {stable_mosaic.version = 11 : i64} {
  func.func @vit_block_kernel(%arg0: i32, %arg1: memref<2x8x32xf32, #tpu.memory_space<vmem>>, %arg2: memref<4x32x8xbf16, #tpu.memory_space<vmem>>, %arg3: memref<4x32x8xbf16, #tpu.memory_space<vmem>>, %arg4: memref<4x32x8xbf16, #tpu.memory_space<vmem>>, %arg5: memref<4x1x8xf32, #tpu.memory_space<vmem>>, %arg6: memref<4x1x8xf32, #tpu.memory_space<vmem>>, %arg7: memref<4x1x8xf32, #tpu.memory_space<vmem>>, %arg8: memref<4x8x32xbf16, #tpu.memory_space<vmem>>, %arg9: memref<1x32xf32, #tpu.memory_space<vmem>>, %arg10: memref<1x32xf32, #tpu.memory_space<vmem>>, %arg11: memref<1x32xf32, #tpu.memory_space<vmem>>, %arg12: memref<32x64xbf16, #tpu.memory_space<vmem>>, %arg13: memref<1x64xf32, #tpu.memory_space<vmem>>, %arg14: memref<64x32xbf16, #tpu.memory_space<vmem>>, %arg15: memref<1x32xf32, #tpu.memory_space<vmem>>, %arg16: memref<1x32xf32, #tpu.memory_space<vmem>>, %arg17: memref<1x32xf32, #tpu.memory_space<vmem>>, %arg18: memref<2x8x32xf32, #tpu.memory_space<vmem>>) attributes {dimension_semantics = [#tpu.dimension_semantics<parallel>], iteration_bounds = array<i64: 1>, scalar_prefetch = 0 : i64, scratch_operands = 0 : i64, tpu.core_type = #tpu.core_type<tc>, window_params = [{transform_indices = @transform_0, window_bounds = array<i64: 2, 8, 32>}, {pipeline_mode = #tpu.pipeline_mode<synchronous>, transform_indices = @transform_1, window_bounds = array<i64: 4, 32, 8>}, {pipeline_mode = #tpu.pipeline_mode<synchronous>, transform_indices = @transform_2, window_bounds = array<i64: 4, 32, 8>}, {pipeline_mode = #tpu.pipeline_mode<synchronous>, transform_indices = @transform_3, window_bounds = array<i64: 4, 32, 8>}, {pipeline_mode = #tpu.pipeline_mode<synchronous>, transform_indices = @transform_4, window_bounds = array<i64: 4, 1, 8>}, {pipeline_mode = #tpu.pipeline_mode<synchronous>, transform_indices = @transform_5, window_bounds = array<i64: 4, 1, 8>}, {pipeline_mode = #tpu.pipeline_mode<synchronous>, transform_indices = @transform_6, window_bounds = array<i64: 4, 1, 8>}, {pipeline_mode = #tpu.pipeline_mode<synchronous>, transform_indices = @transform_7, window_bounds = array<i64: 4, 8, 32>}, {pipeline_mode = #tpu.pipeline_mode<synchronous>, transform_indices = @transform_8, window_bounds = array<i64: 1, 32>}, {pipeline_mode = #tpu.pipeline_mode<synchronous>, transform_indices = @transform_9, window_bounds = array<i64: 1, 32>}, {pipeline_mode = #tpu.pipeline_mode<synchronous>, transform_indices = @transform_10, window_bounds = array<i64: 1, 32>}, {pipeline_mode = #tpu.pipeline_mode<synchronous>, transform_indices = @transform_11, window_bounds = array<i64: 32, 64>}, {pipeline_mode = #tpu.pipeline_mode<synchronous>, transform_indices = @transform_12, window_bounds = array<i64: 1, 64>}, {pipeline_mode = #tpu.pipeline_mode<synchronous>, transform_indices = @transform_13, window_bounds = array<i64: 64, 32>}, {pipeline_mode = #tpu.pipeline_mode<synchronous>, transform_indices = @transform_14, window_bounds = array<i64: 1, 32>}, {pipeline_mode = #tpu.pipeline_mode<synchronous>, transform_indices = @transform_15, window_bounds = array<i64: 1, 32>}, {pipeline_mode = #tpu.pipeline_mode<synchronous>, transform_indices = @transform_16, window_bounds = array<i64: 1, 32>}, {transform_indices = @transform_17, window_bounds = array<i64: 2, 8, 32>}]} {
    %c0 = arith.constant 0 : index
    %c0_0 = arith.constant 0 : index
    %c0_1 = arith.constant 0 : index
    %0 = vector.load %arg1[%c0, %c0_0, %c0_1] : memref<2x8x32xf32, #tpu.memory_space<vmem>>, vector<2x8x32xf32>
    %1 = vector.shape_cast %0 : vector<2x8x32xf32> to vector<16x32xf32>
    %2 = arith.truncf %0 : vector<2x8x32xf32> to vector<2x8x32xbf16>
    %3 = vector.shape_cast %2 : vector<2x8x32xbf16> to vector<2x1x8x32xbf16>
    %4 = vector.shape_cast %3 : vector<2x1x8x32xbf16> to vector<2x1x8x32xbf16>
    %5 = vector.broadcast %4 : vector<2x1x8x32xbf16> to vector<2x4x8x32xbf16>
    %6 = vector.shape_cast %5 : vector<2x4x8x32xbf16> to vector<8x8x32xbf16>
    %c0_2 = arith.constant 0 : index
    %c0_3 = arith.constant 0 : index
    %c0_4 = arith.constant 0 : index
    %7 = vector.load %arg2[%c0_2, %c0_3, %c0_4] : memref<4x32x8xbf16, #tpu.memory_space<vmem>>, vector<4x32x8xbf16>
    %8 = vector.shape_cast %7 : vector<4x32x8xbf16> to vector<1x4x32x8xbf16>
    %9 = vector.shape_cast %8 : vector<1x4x32x8xbf16> to vector<1x4x32x8xbf16>
    %10 = vector.broadcast %9 : vector<1x4x32x8xbf16> to vector<2x4x32x8xbf16>
    %11 = vector.shape_cast %10 : vector<2x4x32x8xbf16> to vector<8x32x8xbf16>
    %c0_5 = arith.constant 0 : index
    %c0_6 = arith.constant 0 : index
    %c0_7 = arith.constant 0 : index
    %12 = vector.load %arg3[%c0_5, %c0_6, %c0_7] : memref<4x32x8xbf16, #tpu.memory_space<vmem>>, vector<4x32x8xbf16>
    %13 = vector.shape_cast %12 : vector<4x32x8xbf16> to vector<1x4x32x8xbf16>
    %14 = vector.shape_cast %13 : vector<1x4x32x8xbf16> to vector<1x4x32x8xbf16>
    %15 = vector.broadcast %14 : vector<1x4x32x8xbf16> to vector<2x4x32x8xbf16>
    %16 = vector.shape_cast %15 : vector<2x4x32x8xbf16> to vector<8x32x8xbf16>
    %c0_8 = arith.constant 0 : index
    %c0_9 = arith.constant 0 : index
    %c0_10 = arith.constant 0 : index
    %17 = vector.load %arg4[%c0_8, %c0_9, %c0_10] : memref<4x32x8xbf16, #tpu.memory_space<vmem>>, vector<4x32x8xbf16>
    %18 = vector.shape_cast %17 : vector<4x32x8xbf16> to vector<1x4x32x8xbf16>
    %19 = vector.shape_cast %18 : vector<1x4x32x8xbf16> to vector<1x4x32x8xbf16>
    %20 = vector.broadcast %19 : vector<1x4x32x8xbf16> to vector<2x4x32x8xbf16>
    %21 = vector.shape_cast %20 : vector<2x4x32x8xbf16> to vector<8x32x8xbf16>
    "tpu.trace_start"() <{level = 10 : i32, message = "zle,zed->zld"}> : () -> ()
    %cst = arith.constant dense<0.000000e+00> : vector<8x8x8xf32>
    %22 = tpu.matmul %6, %11, %cst {dimension_numbers = #tpu.dot_dimension_numbers<[2], [1], [1], [2], [0, 0, 0, 1, 1, 2], [0], [0]>} : vector<8x8x32xbf16>, vector<8x32x8xbf16>, vector<8x8x8xf32> -> vector<8x8x8xf32>
    "tpu.trace_stop"() : () -> ()
    %c0_11 = arith.constant 0 : index
    %c0_12 = arith.constant 0 : index
    %c0_13 = arith.constant 0 : index
    %23 = vector.load %arg5[%c0_11, %c0_12, %c0_13] : memref<4x1x8xf32, #tpu.memory_space<vmem>>, vector<4x1x8xf32>
    %24 = vector.shape_cast %23 : vector<4x1x8xf32> to vector<1x4x1x8xf32>
    %25 = vector.shape_cast %24 : vector<1x4x1x8xf32> to vector<1x4x1x8xf32>
    %26 = vector.broadcast %25 : vector<1x4x1x8xf32> to vector<2x4x1x8xf32>
    %27 = vector.shape_cast %26 : vector<2x4x1x8xf32> to vector<8x1x8xf32>
    %28 = vector.broadcast %27 : vector<8x1x8xf32> to vector<8x8x8xf32>
    %29 = arith.addf %22, %28 : vector<8x8x8xf32>
    "tpu.trace_start"() <{level = 10 : i32, message = "zle,zed->zld"}> : () -> ()
    %cst_14 = arith.constant dense<0.000000e+00> : vector<8x8x8xf32>
    %30 = tpu.matmul %6, %16, %cst_14 {dimension_numbers = #tpu.dot_dimension_numbers<[2], [1], [1], [2], [0, 0, 0, 1, 1, 2], [0], [0]>} : vector<8x8x32xbf16>, vector<8x32x8xbf16>, vector<8x8x8xf32> -> vector<8x8x8xf32>
    "tpu.trace_stop"() : () -> ()
    %c0_15 = arith.constant 0 : index
    %c0_16 = arith.constant 0 : index
    %c0_17 = arith.constant 0 : index
    %31 = vector.load %arg6[%c0_15, %c0_16, %c0_17] : memref<4x1x8xf32, #tpu.memory_space<vmem>>, vector<4x1x8xf32>
    %32 = vector.shape_cast %31 : vector<4x1x8xf32> to vector<1x4x1x8xf32>
    %33 = vector.shape_cast %32 : vector<1x4x1x8xf32> to vector<1x4x1x8xf32>
    %34 = vector.broadcast %33 : vector<1x4x1x8xf32> to vector<2x4x1x8xf32>
    %35 = vector.shape_cast %34 : vector<2x4x1x8xf32> to vector<8x1x8xf32>
    %36 = vector.broadcast %35 : vector<8x1x8xf32> to vector<8x8x8xf32>
    %37 = arith.addf %30, %36 : vector<8x8x8xf32>
    "tpu.trace_start"() <{level = 10 : i32, message = "zle,zed->zld"}> : () -> ()
    %cst_18 = arith.constant dense<0.000000e+00> : vector<8x8x8xf32>
    %38 = tpu.matmul %6, %21, %cst_18 {dimension_numbers = #tpu.dot_dimension_numbers<[2], [1], [1], [2], [0, 0, 0, 1, 1, 2], [0], [0]>} : vector<8x8x32xbf16>, vector<8x32x8xbf16>, vector<8x8x8xf32> -> vector<8x8x8xf32>
    "tpu.trace_stop"() : () -> ()
    %c0_19 = arith.constant 0 : index
    %c0_20 = arith.constant 0 : index
    %c0_21 = arith.constant 0 : index
    %39 = vector.load %arg7[%c0_19, %c0_20, %c0_21] : memref<4x1x8xf32, #tpu.memory_space<vmem>>, vector<4x1x8xf32>
    %40 = vector.shape_cast %39 : vector<4x1x8xf32> to vector<1x4x1x8xf32>
    %41 = vector.shape_cast %40 : vector<1x4x1x8xf32> to vector<1x4x1x8xf32>
    %42 = vector.broadcast %41 : vector<1x4x1x8xf32> to vector<2x4x1x8xf32>
    %43 = vector.shape_cast %42 : vector<2x4x1x8xf32> to vector<8x1x8xf32>
    %44 = vector.broadcast %43 : vector<8x1x8xf32> to vector<8x8x8xf32>
    %45 = arith.addf %38, %44 : vector<8x8x8xf32>
    %46 = arith.truncf %29 : vector<8x8x8xf32> to vector<8x8x8xbf16>
    %47 = arith.truncf %37 : vector<8x8x8xf32> to vector<8x8x8xbf16>
    "tpu.trace_start"() <{level = 10 : i32, message = "zqd,zkd->zqk"}> : () -> ()
    %cst_22 = arith.constant dense<0.000000e+00> : vector<8x8x8xf32>
    %48 = tpu.matmul %46, %47, %cst_22 {dimension_numbers = #tpu.dot_dimension_numbers<[2], [2], [1], [1], [0, 0, 0, 1, 1, 1], [0], [0]>} : vector<8x8x8xbf16>, vector<8x8x8xbf16>, vector<8x8x8xf32> -> vector<8x8x8xf32>
    "tpu.trace_stop"() : () -> ()
    %cst_23 = arith.constant dense<0xFF800000> : vector<8x8xf32>
    %49 = vector.multi_reduction <maximumf>, %48, %cst_23 [2] : vector<8x8x8xf32> to vector<8x8xf32>
    %50 = vector.shape_cast %49 : vector<8x8xf32> to vector<8x8x1xf32>
    %51 = vector.broadcast %50 : vector<8x8x1xf32> to vector<8x8x8xf32>
    %52 = arith.subf %48, %51 : vector<8x8x8xf32>
    %53 = arith.truncf %52 : vector<8x8x8xf32> to vector<8x8x8xbf16>
    %54 = math.exp %53 : vector<8x8x8xbf16>
    %55 = arith.extf %54 : vector<8x8x8xbf16> to vector<8x8x8xf32>
    %cst_24 = arith.constant dense<0.000000e+00> : vector<8x8xf32>
    %56 = vector.multi_reduction <add>, %55, %cst_24 [2] : vector<8x8x8xf32> to vector<8x8xf32>
    %57 = vector.shape_cast %56 : vector<8x8xf32> to vector<8x8x1xf32>
    %58 = arith.truncf %45 : vector<8x8x8xf32> to vector<8x8x8xbf16>
    "tpu.trace_start"() <{level = 10 : i32, message = "zqk,zkd->zqd"}> : () -> ()
    %cst_25 = arith.constant dense<0.000000e+00> : vector<8x8x8xf32>
    %59 = tpu.matmul %54, %58, %cst_25 {dimension_numbers = #tpu.dot_dimension_numbers<[2], [1], [1], [2], [0, 0, 0, 1, 1, 2], [0], [0]>} : vector<8x8x8xbf16>, vector<8x8x8xbf16>, vector<8x8x8xf32> -> vector<8x8x8xf32>
    "tpu.trace_stop"() : () -> ()
    %60 = tpu.reciprocal %57 {approx = true} : vector<8x8x1xf32> -> vector<8x8x1xf32>
    %61 = vector.broadcast %60 : vector<8x8x1xf32> to vector<8x8x8xf32>
    %62 = arith.mulf %59, %61 : vector<8x8x8xf32>
    %63 = arith.truncf %62 : vector<8x8x8xf32> to vector<8x8x8xbf16>
    %c0_26 = arith.constant 0 : index
    %c0_27 = arith.constant 0 : index
    %c0_28 = arith.constant 0 : index
    %64 = vector.load %arg8[%c0_26, %c0_27, %c0_28] : memref<4x8x32xbf16, #tpu.memory_space<vmem>>, vector<4x8x32xbf16>
    %65 = vector.shape_cast %64 : vector<4x8x32xbf16> to vector<1x4x8x32xbf16>
    %66 = vector.shape_cast %65 : vector<1x4x8x32xbf16> to vector<1x4x8x32xbf16>
    %67 = vector.broadcast %66 : vector<1x4x8x32xbf16> to vector<2x4x8x32xbf16>
    %68 = vector.shape_cast %67 : vector<2x4x8x32xbf16> to vector<8x8x32xbf16>
    "tpu.trace_start"() <{level = 10 : i32, message = "zld,zde->zle"}> : () -> ()
    %cst_29 = arith.constant dense<0.000000e+00> : vector<8x8x32xf32>
    %69 = tpu.matmul %63, %68, %cst_29 {dimension_numbers = #tpu.dot_dimension_numbers<[2], [1], [1], [2], [0, 0, 0, 1, 1, 2], [0], [0]>} : vector<8x8x8xbf16>, vector<8x8x32xbf16>, vector<8x8x32xf32> -> vector<8x8x32xf32>
    "tpu.trace_stop"() : () -> ()
    %70 = vector.shape_cast %69 : vector<8x8x32xf32> to vector<2x4x8x32xf32>
    %71 = vector.extract_strided_slice %70 {offsets = [0, 0, 0, 0], sizes = [2, 1, 8, 32], strides = [1, 1, 1, 1]} : vector<2x4x8x32xf32> to vector<2x1x8x32xf32>
    %72 = vector.shape_cast %71 : vector<2x1x8x32xf32> to vector<2x8x32xf32>
    %73 = vector.extract_strided_slice %70 {offsets = [0, 1, 0, 0], sizes = [2, 1, 8, 32], strides = [1, 1, 1, 1]} : vector<2x4x8x32xf32> to vector<2x1x8x32xf32>
    %74 = vector.shape_cast %73 : vector<2x1x8x32xf32> to vector<2x8x32xf32>
    %75 = arith.addf %72, %74 : vector<2x8x32xf32>
    %76 = vector.extract_strided_slice %70 {offsets = [0, 2, 0, 0], sizes = [2, 1, 8, 32], strides = [1, 1, 1, 1]} : vector<2x4x8x32xf32> to vector<2x1x8x32xf32>
    %77 = vector.shape_cast %76 : vector<2x1x8x32xf32> to vector<2x8x32xf32>
    %78 = arith.addf %75, %77 : vector<2x8x32xf32>
    %79 = vector.extract_strided_slice %70 {offsets = [0, 3, 0, 0], sizes = [2, 1, 8, 32], strides = [1, 1, 1, 1]} : vector<2x4x8x32xf32> to vector<2x1x8x32xf32>
    %80 = vector.shape_cast %79 : vector<2x1x8x32xf32> to vector<2x8x32xf32>
    %81 = arith.addf %78, %80 : vector<2x8x32xf32>
    %82 = vector.shape_cast %81 : vector<2x8x32xf32> to vector<16x32xf32>
    %c0_30 = arith.constant 0 : index
    %c0_31 = arith.constant 0 : index
    %83 = vector.load %arg9[%c0_30, %c0_31] : memref<1x32xf32, #tpu.memory_space<vmem>>, vector<1x32xf32>
    %84 = vector.broadcast %83 : vector<1x32xf32> to vector<16x32xf32>
    %85 = arith.addf %82, %84 : vector<16x32xf32>
    %86 = arith.addf %1, %85 : vector<16x32xf32>
    %cst_32 = arith.constant dense<0.000000e+00> : vector<16xf32>
    %87 = vector.multi_reduction <add>, %86, %cst_32 [1] : vector<16x32xf32> to vector<16xf32>
    %88 = vector.shape_cast %87 : vector<16xf32> to vector<16x1xf32>
    %cst_33 = arith.constant 3.200000e+01 : f32
    %89 = vector.broadcast %cst_33 : f32 to vector<16x1xf32>
    %90 = arith.divf %88, %89 : vector<16x1xf32>
    %91 = vector.broadcast %90 : vector<16x1xf32> to vector<16x32xf32>
    %92 = arith.subf %86, %91 : vector<16x32xf32>
    %93 = arith.mulf %92, %92 : vector<16x32xf32>
    %cst_34 = arith.constant dense<0.000000e+00> : vector<16xf32>
    %94 = vector.multi_reduction <add>, %93, %cst_34 [1] : vector<16x32xf32> to vector<16xf32>
    %95 = vector.shape_cast %94 : vector<16xf32> to vector<16x1xf32>
    %cst_35 = arith.constant 3.200000e+01 : f32
    %96 = vector.broadcast %cst_35 : f32 to vector<16x1xf32>
    %97 = arith.divf %95, %96 : vector<16x1xf32>
    %98 = vector.broadcast %90 : vector<16x1xf32> to vector<16x32xf32>
    %99 = arith.subf %86, %98 : vector<16x32xf32>
    %cst_36 = arith.constant 9.99999974E-6 : f32
    %100 = vector.broadcast %cst_36 : f32 to vector<16x1xf32>
    %101 = arith.addf %97, %100 : vector<16x1xf32>
    %102 = math.rsqrt %101 : vector<16x1xf32>
    %103 = vector.broadcast %102 : vector<16x1xf32> to vector<16x32xf32>
    %104 = arith.mulf %99, %103 : vector<16x32xf32>
    %c0_37 = arith.constant 0 : index
    %c0_38 = arith.constant 0 : index
    %105 = vector.load %arg10[%c0_37, %c0_38] : memref<1x32xf32, #tpu.memory_space<vmem>>, vector<1x32xf32>
    %106 = vector.broadcast %105 : vector<1x32xf32> to vector<16x32xf32>
    %107 = arith.mulf %104, %106 : vector<16x32xf32>
    %c0_39 = arith.constant 0 : index
    %c0_40 = arith.constant 0 : index
    %108 = vector.load %arg11[%c0_39, %c0_40] : memref<1x32xf32, #tpu.memory_space<vmem>>, vector<1x32xf32>
    %109 = vector.broadcast %108 : vector<1x32xf32> to vector<16x32xf32>
    %110 = arith.addf %107, %109 : vector<16x32xf32>
    %111 = arith.truncf %110 : vector<16x32xf32> to vector<16x32xbf16>
    %c0_41 = arith.constant 0 : index
    %c0_42 = arith.constant 0 : index
    %112 = vector.load %arg12[%c0_41, %c0_42] : memref<32x64xbf16, #tpu.memory_space<vmem>>, vector<32x64xbf16>
    %cst_43 = arith.constant dense<0.000000e+00> : vector<16x64xf32>
    %113 = tpu.matmul %111, %112, %cst_43 {dimension_numbers = #tpu.dot_dimension_numbers<[1], [0], [0], [1], [0, 0, 1, 1], [], []>} : vector<16x32xbf16>, vector<32x64xbf16>, vector<16x64xf32> -> vector<16x64xf32>
    %c0_44 = arith.constant 0 : index
    %c0_45 = arith.constant 0 : index
    %114 = vector.load %arg13[%c0_44, %c0_45] : memref<1x64xf32, #tpu.memory_space<vmem>>, vector<1x64xf32>
    %115 = vector.broadcast %114 : vector<1x64xf32> to vector<16x64xf32>
    %116 = arith.addf %113, %115 : vector<16x64xf32>
    %cst_46 = arith.constant 0.000000e+00 : f32
    %117 = vector.broadcast %cst_46 : f32 to vector<16x64xf32>
    %118 = arith.maximumf %116, %117 : vector<16x64xf32>
    %119 = arith.truncf %118 : vector<16x64xf32> to vector<16x64xbf16>
    %c0_47 = arith.constant 0 : index
    %c0_48 = arith.constant 0 : index
    %120 = vector.load %arg14[%c0_47, %c0_48] : memref<64x32xbf16, #tpu.memory_space<vmem>>, vector<64x32xbf16>
    %cst_49 = arith.constant dense<0.000000e+00> : vector<16x32xf32>
    %121 = tpu.matmul %119, %120, %cst_49 {dimension_numbers = #tpu.dot_dimension_numbers<[1], [0], [0], [1], [0, 0, 1, 1], [], []>} : vector<16x64xbf16>, vector<64x32xbf16>, vector<16x32xf32> -> vector<16x32xf32>
    %c0_50 = arith.constant 0 : index
    %c0_51 = arith.constant 0 : index
    %122 = vector.load %arg15[%c0_50, %c0_51] : memref<1x32xf32, #tpu.memory_space<vmem>>, vector<1x32xf32>
    %123 = vector.broadcast %122 : vector<1x32xf32> to vector<16x32xf32>
    %124 = arith.addf %121, %123 : vector<16x32xf32>
    %125 = arith.addf %110, %124 : vector<16x32xf32>
    %cst_52 = arith.constant dense<0.000000e+00> : vector<16xf32>
    %126 = vector.multi_reduction <add>, %125, %cst_52 [1] : vector<16x32xf32> to vector<16xf32>
    %127 = vector.shape_cast %126 : vector<16xf32> to vector<16x1xf32>
    %cst_53 = arith.constant 3.200000e+01 : f32
    %128 = vector.broadcast %cst_53 : f32 to vector<16x1xf32>
    %129 = arith.divf %127, %128 : vector<16x1xf32>
    %130 = vector.broadcast %129 : vector<16x1xf32> to vector<16x32xf32>
    %131 = arith.subf %125, %130 : vector<16x32xf32>
    %132 = arith.mulf %131, %131 : vector<16x32xf32>
    %cst_54 = arith.constant dense<0.000000e+00> : vector<16xf32>
    %133 = vector.multi_reduction <add>, %132, %cst_54 [1] : vector<16x32xf32> to vector<16xf32>
    %134 = vector.shape_cast %133 : vector<16xf32> to vector<16x1xf32>
    %cst_55 = arith.constant 3.200000e+01 : f32
    %135 = vector.broadcast %cst_55 : f32 to vector<16x1xf32>
    %136 = arith.divf %134, %135 : vector<16x1xf32>
    %137 = vector.broadcast %129 : vector<16x1xf32> to vector<16x32xf32>
    %138 = arith.subf %125, %137 : vector<16x32xf32>
    %cst_56 = arith.constant 9.99999974E-6 : f32
    %139 = vector.broadcast %cst_56 : f32 to vector<16x1xf32>
    %140 = arith.addf %136, %139 : vector<16x1xf32>
    %141 = math.rsqrt %140 : vector<16x1xf32>
    %142 = vector.broadcast %141 : vector<16x1xf32> to vector<16x32xf32>
    %143 = arith.mulf %138, %142 : vector<16x32xf32>
    %c0_57 = arith.constant 0 : index
    %c0_58 = arith.constant 0 : index
    %144 = vector.load %arg16[%c0_57, %c0_58] : memref<1x32xf32, #tpu.memory_space<vmem>>, vector<1x32xf32>
    %145 = vector.broadcast %144 : vector<1x32xf32> to vector<16x32xf32>
    %146 = arith.mulf %143, %145 : vector<16x32xf32>
    %c0_59 = arith.constant 0 : index
    %c0_60 = arith.constant 0 : index
    %147 = vector.load %arg17[%c0_59, %c0_60] : memref<1x32xf32, #tpu.memory_space<vmem>>, vector<1x32xf32>
    %148 = vector.broadcast %147 : vector<1x32xf32> to vector<16x32xf32>
    %149 = arith.addf %146, %148 : vector<16x32xf32>
    %150 = vector.shape_cast %149 : vector<16x32xf32> to vector<2x8x32xf32>
    %c0_61 = arith.constant 0 : index
    %c0_62 = arith.constant 0 : index
    %c0_63 = arith.constant 0 : index
    %151 = vector.load %arg18[%c0_61, %c0_62, %c0_63] : memref<2x8x32xf32, #tpu.memory_space<vmem>>, vector<2x8x32xf32>
    tpu.vector_store %arg18[%c0_61, %c0_62, %c0_63], %150 {strides = array<i32>} : memref<2x8x32xf32, #tpu.memory_space<vmem>>, vector<2x8x32xf32>,
    return
  }
  func.func @transform_0(%arg0: i32) -> (i32, i32, i32) {
    %c0_i32 = arith.constant 0 : i32
    %c0_i32_0 = arith.constant 0 : i32
    %c0_i32_1 = arith.constant 0 : i32
    return %arg0, %c0_i32, %c0_i32_0 : i32, i32, i32
  }
  func.func @transform_1(%arg0: i32) -> (i32, i32, i32) {
    %c0_i32 = arith.constant 0 : i32
    %c0_i32_0 = arith.constant 0 : i32
    %c0_i32_1 = arith.constant 0 : i32
    %c0_i32_2 = arith.constant 0 : i32
    return %c0_i32, %c0_i32_0, %c0_i32_1 : i32, i32, i32
  }
  func.func @transform_2(%arg0: i32) -> (i32, i32, i32) {
    %c0_i32 = arith.constant 0 : i32
    %c0_i32_0 = arith.constant 0 : i32
    %c0_i32_1 = arith.constant 0 : i32
    %c0_i32_2 = arith.constant 0 : i32
    return %c0_i32, %c0_i32_0, %c0_i32_1 : i32, i32, i32
  }
  func.func @transform_3(%arg0: i32) -> (i32, i32, i32) {
    %c0_i32 = arith.constant 0 : i32
    %c0_i32_0 = arith.constant 0 : i32
    %c0_i32_1 = arith.constant 0 : i32
    %c0_i32_2 = arith.constant 0 : i32
    return %c0_i32, %c0_i32_0, %c0_i32_1 : i32, i32, i32
  }
  func.func @transform_4(%arg0: i32) -> (i32, i32, i32) {
    %c0_i32 = arith.constant 0 : i32
    %c0_i32_0 = arith.constant 0 : i32
    %c0_i32_1 = arith.constant 0 : i32
    %c0_i32_2 = arith.constant 0 : i32
    return %c0_i32, %c0_i32_0, %c0_i32_1 : i32, i32, i32
  }
  func.func @transform_5(%arg0: i32) -> (i32, i32, i32) {
    %c0_i32 = arith.constant 0 : i32
    %c0_i32_0 = arith.constant 0 : i32
    %c0_i32_1 = arith.constant 0 : i32
    %c0_i32_2 = arith.constant 0 : i32
    return %c0_i32, %c0_i32_0, %c0_i32_1 : i32, i32, i32
  }
  func.func @transform_6(%arg0: i32) -> (i32, i32, i32) {
    %c0_i32 = arith.constant 0 : i32
    %c0_i32_0 = arith.constant 0 : i32
    %c0_i32_1 = arith.constant 0 : i32
    %c0_i32_2 = arith.constant 0 : i32
    return %c0_i32, %c0_i32_0, %c0_i32_1 : i32, i32, i32
  }
  func.func @transform_7(%arg0: i32) -> (i32, i32, i32) {
    %c0_i32 = arith.constant 0 : i32
    %c0_i32_0 = arith.constant 0 : i32
    %c0_i32_1 = arith.constant 0 : i32
    %c0_i32_2 = arith.constant 0 : i32
    return %c0_i32, %c0_i32_0, %c0_i32_1 : i32, i32, i32
  }
  func.func @transform_8(%arg0: i32) -> (i32, i32) {
    %c0_i32 = arith.constant 0 : i32
    %c0_i32_0 = arith.constant 0 : i32
    %c0_i32_1 = arith.constant 0 : i32
    return %c0_i32, %c0_i32_0 : i32, i32
  }
  func.func @transform_9(%arg0: i32) -> (i32, i32) {
    %c0_i32 = arith.constant 0 : i32
    %c0_i32_0 = arith.constant 0 : i32
    %c0_i32_1 = arith.constant 0 : i32
    return %c0_i32, %c0_i32_0 : i32, i32
  }
  func.func @transform_10(%arg0: i32) -> (i32, i32) {
    %c0_i32 = arith.constant 0 : i32
    %c0_i32_0 = arith.constant 0 : i32
    %c0_i32_1 = arith.constant 0 : i32
    return %c0_i32, %c0_i32_0 : i32, i32
  }
  func.func @transform_11(%arg0: i32) -> (i32, i32) {
    %c0_i32 = arith.constant 0 : i32
    %c0_i32_0 = arith.constant 0 : i32
    %c0_i32_1 = arith.constant 0 : i32
    return %c0_i32, %c0_i32_0 : i32, i32
  }
  func.func @transform_12(%arg0: i32) -> (i32, i32) {
    %c0_i32 = arith.constant 0 : i32
    %c0_i32_0 = arith.constant 0 : i32
    %c0_i32_1 = arith.constant 0 : i32
    return %c0_i32, %c0_i32_0 : i32, i32
  }
  func.func @transform_13(%arg0: i32) -> (i32, i32) {
    %c0_i32 = arith.constant 0 : i32
    %c0_i32_0 = arith.constant 0 : i32
    %c0_i32_1 = arith.constant 0 : i32
    return %c0_i32, %c0_i32_0 : i32, i32
  }
  func.func @transform_14(%arg0: i32) -> (i32, i32) {
    %c0_i32 = arith.constant 0 : i32
    %c0_i32_0 = arith.constant 0 : i32
    %c0_i32_1 = arith.constant 0 : i32
    return %c0_i32, %c0_i32_0 : i32, i32
  }
  func.func @transform_15(%arg0: i32) -> (i32, i32) {
    %c0_i32 = arith.constant 0 : i32
    %c0_i32_0 = arith.constant 0 : i32
    %c0_i32_1 = arith.constant 0 : i32
    return %c0_i32, %c0_i32_0 : i32, i32
  }
  func.func @transform_16(%arg0: i32) -> (i32, i32) {
    %c0_i32 = arith.constant 0 : i32
    %c0_i32_0 = arith.constant 0 : i32
    %c0_i32_1 = arith.constant 0 : i32
    return %c0_i32, %c0_i32_0 : i32, i32
  }
  func.func @transform_17(%arg0: i32) -> (i32, i32, i32) {
    %c0_i32 = arith.constant 0 : i32
    %c0_i32_0 = arith.constant 0 : i32
    %c0_i32_1 = arith.constant 0 : i32
    return %arg0, %c0_i32, %c0_i32_0 : i32, i32, i32
  }
}

</mosaic_0001>

<bundles_post_ra>
// kernel: tpu_custom_call.1
= control target key start
LH: loop header
LB: loop body
LE: loop exit
PB: predicated region body
PF: predicated region fallthrough
CT: control target
= control target key end

     0   :  { %s4880_s0 = inlined_call_operand.hbm [shape: f32[2,8,32], index: 0, kind: input, shape index: {}]   ;;  %s4881_s1 = inlined_call_operand.hbm [shape: bf16[4,32,8], index: 1, kind: input, shape index: {}]   ;;  %s4882_s2 = inlined_call_operand.hbm [shape: bf16[4,32,8], index: 2, kind: input, shape index: {}]   ;;  %s4883_s3 = inlined_call_operand.hbm [shape: bf16[4,32,8], index: 3, kind: input, shape index: {}]   ;;  %s4884_s4 = inlined_call_operand.hbm [shape: f32[4,1,8], index: 4, kind: input, shape index: {}]   ;;  %s4885_s5 = inlined_call_operand.hbm [shape: f32[4,1,8], index: 5, kind: input, shape index: {}]   ;;  %s4886_s6 = inlined_call_operand.hbm [shape: f32[4,1,8], index: 6, kind: input, shape index: {}]   ;;  %s4887_s7 = inlined_call_operand.hbm [shape: bf16[4,8,32], index: 7, kind: input, shape index: {}]   ;;  %s4888_s8 = inlined_call_operand.hbm [shape: f32[1,32], index: 8, kind: input, shape index: {}]   ;;  %s4889_s9 = inlined_call_operand.hbm [shape: f32[1,32], index: 9, kind: input, shape index: {}]   ;;  %s4890_s10 = inlined_call_operand.hbm [shape: f32[1,32], index: 10, kind: input, shape index: {}]   ;;  %s4891_s11 = inlined_call_operand.hbm [shape: bf16[32,64], index: 11, kind: input, shape index: {}]   ;;  %s4892_s12 = inlined_call_operand.hbm [shape: f32[1,64], index: 12, kind: input, shape index: {}]   ;;  %s4893_s13 = inlined_call_operand.hbm [shape: bf16[64,32], index: 13, kind: input, shape index: {}]   ;;  %s4894_s14 = inlined_call_operand.hbm [shape: f32[1,32], index: 14, kind: input, shape index: {}]   ;;  %s4895_s15 = inlined_call_operand.hbm [shape: f32[1,32], index: 15, kind: input, shape index: {}]   ;;  %s4896_s16 = inlined_call_operand.hbm [shape: f32[1,32], index: 16, kind: input, shape index: {}]   ;;  %s4897_s17 = inlined_call_operand.hbm [shape: f32[2,8,32], index: 17, kind: output, shape index: {}]  }
   0x1   :  { %4901 = sst [smem:[#allocation40_spill]] %s4880_s0 }
   0x2   :  { %4902 = sst [smem:[#allocation41_spill]] %s4881_s1 }
   0x3   :  { %4903 = sst [smem:[#allocation42_spill]] %s4897_s17 }
   0x4   :  { %22 = vsyncpa [#allocation3], 0 }
   0x5   :  { %23 = vsyncpa [#allocation6], 0 }
   0x6   :  { %24 = vsyncpa [#allocation9], 0 }
   0x7   :  { %25 = vsyncpa [#allocation12], 0 }
   0x8   :  { %26 = vsyncpa [#allocation15], 0 }
   0x9   :  { %27 = vsyncpa [#allocation18], 0 }
   0xa   :  { %28 = vsyncpa [#allocation21], 0 }
   0xb   :  { %29 = vsyncpa [#allocation24], 0 }
   0xc   :  { %30 = vsyncpa [#allocation27], 0 }
   0xd   :  { %31 = vsyncpa [#allocation4], 0  ;;  %s4150_s24 = smov [#allocation5]   ;;  %s4904_s28 = sld [smem:[#allocation41_spill]] }
   0xe   :  { %s49_s25 = sshll.u32 %s4150_s24, 4  ;;  %s50_s25 = int_to_ptr.vmem [resolvable:$true] %s49_s25 }
  0x13   :  { %s3734_s29 = scalar_lea.hbm %s4904_s28, 1024 }
  0x14   :  { %p3735_p0 = scmp.ne.s32.totalorder %s4904_s28, %s3734_s29  ;;  %p3738_p1 = scmp.lt.u32.totalorder %s3734_s29, %s4904_s28 }
  0x16   :  { %p3740_p2 = pnand %p3738_p1, %p3735_p0 }
  0x18   :  { %3743 = shalt.err (!%p3740_p2)
}
  0x19   :  { %s3744_s1 = scalar_lea.vmem %s50_s25, 1024  ;;  %p3749_p4 = scmp.lt.s32.totalorder %s50_s25, %s50_s25 }
  0x1a   :  { %p3745_p3 = scmp.ne.s32.totalorder %s50_s25, %s3744_s1  ;;  %p3750_p5 = scmp.lt.s32.totalorder %s3744_s1, %s3744_s1 }
  0x1c   :  { %p3751_p6 = por %p3750_p5, %p3749_p4 }
  0x1e   :  { %p3752_p7 = pnand %p3751_p6, %p3745_p3 }
  0x20   :  { %3755 = shalt.err (!%p3752_p7)
}
  0x21   :  { %s4151_s20 = smov 64   ;;  %s4152_s21 = smov 4  }
  0x22   :  { %55 = dma.hbm_to_vmem [thread:$0]  %s4904_s28, 1024, %s50_s25, [#allocation6], %s4151_s20, %s4151_s20, %s4152_s21  }
  0x23   :  { %s4153_s24 = smov [#allocation8]   ;;  %s3756_s0 = scalar_lea.hbm %s4883_s3, 1024 }
  0x24   :  { %s73_s26 = sshll.u32 %s4153_s24, 4  ;;  %p3757_p8 = scmp.ne.s32.totalorder %s4883_s3, %s3756_s0  ;;  %s74_s26 = int_to_ptr.vmem [resolvable:$true] %s73_s26 }
  0x25   :  { %p3760_p9 = scmp.lt.u32.totalorder %s3756_s0, %s4883_s3 }
  0x27   :  { %p3762_p10 = pnand %p3760_p9, %p3757_p8 }
  0x29   :  { %3765 = shalt.err (!%p3762_p10)
}
  0x2a   :  { %s3766_s17 = scalar_lea.vmem %s74_s26, 1024  ;;  %p3771_p12 = scmp.lt.s32.totalorder %s74_s26, %s74_s26 }
  0x2b   :  { %p3767_p11 = scmp.ne.s32.totalorder %s74_s26, %s3766_s17  ;;  %p3772_p13 = scmp.lt.s32.totalorder %s3766_s17, %s3766_s17 }
  0x2d   :  { %p3773_p0 = por %p3772_p13, %p3771_p12 }
  0x2f   :  { %p3774_p1 = pnand %p3773_p0, %p3767_p11 }
  0x31   :  { %3777 = shalt.err (!%p3774_p1)
}
  0x32   :  { %79 = dma.hbm_to_vmem [thread:$0]  %s4883_s3, 1024, %s74_s26, [#allocation9], %s4151_s20, %s4151_s20, %s4152_s21  }
  0x33   :  { %s4154_s22 = smov [#allocation11]   ;;  %s4155_s24 = smov [#allocation14]  }
  0x34   :  { %s97_s23 = sshll.u32 %s4154_s22, 4  ;;  %s121_s27 = sshll.u32 %s4155_s24, 4  ;;  %s98_s23 = int_to_ptr.vmem [resolvable:$true] %s97_s23  ;;  %s4296_s27 = int_to_ptr.vmem [resolvable:$true] %s121_s27 }
  0x35   :  { %s3778_s17 = scalar_lea.hbm %s4885_s5, 64 }
  0x36   :  { %p3779_p2 = scmp.ne.s32.totalorder %s4885_s5, %s3778_s17  ;;  %p3782_p3 = scmp.lt.u32.totalorder %s3778_s17, %s4885_s5 }
  0x38   :  { %p3784_p4 = pnand %p3782_p3, %p3779_p2 }
  0x3a   :  { %3787 = shalt.err (!%p3784_p4)
}
  0x3b   :  { %s3788_s3 = scalar_lea.vmem %s98_s23, 64  ;;  %p3793_p6 = scmp.lt.s32.totalorder %s98_s23, %s98_s23 }
  0x3c   :  { %p3789_p5 = scmp.ne.s32.totalorder %s98_s23, %s3788_s3  ;;  %p3794_p7 = scmp.lt.s32.totalorder %s3788_s3, %s3788_s3 }
  0x3e   :  { %p3795_p8 = por %p3794_p7, %p3793_p6 }
  0x40   :  { %p3796_p9 = pnand %p3795_p8, %p3789_p5 }
  0x42   :  { %3799 = shalt.err (!%p3796_p9)
}
  0x43   :  { %s4156_s26 = smov 16   ;;  %s4157_s25 = smov 1  }
  0x44   :  { %103 = dma.hbm_to_vmem [thread:$0]  %s4885_s5, 64, %s98_s23, [#allocation12], %s4156_s26, %s4156_s26, %s4157_s25  }
  0x45   :  { %s3800_s0 = scalar_lea.hbm %s4887_s7, 256 }
  0x46   :  { %p3801_p10 = scmp.ne.s32.totalorder %s4887_s7, %s3800_s0  ;;  %p3804_p11 = scmp.lt.u32.totalorder %s3800_s0, %s4887_s7 }
  0x48   :  { %p3806_p12 = pnand %p3804_p11, %p3801_p10 }
  0x4a   :  { %3809 = shalt.err (!%p3806_p12)
}
  0x4b   :  { %s3810_s1 = scalar_lea.vmem %s4296_s27, 256  ;;  %p3815_p0 = scmp.lt.s32.totalorder %s4296_s27, %s4296_s27 }
  0x4c   :  { %p3811_p13 = scmp.ne.s32.totalorder %s4296_s27, %s3810_s1  ;;  %p3816_p1 = scmp.lt.s32.totalorder %s3810_s1, %s3810_s1 }
  0x4e   :  { %p3817_p2 = por %p3816_p1, %p3815_p0 }
  0x50   :  { %p3818_p3 = pnand %p3817_p2, %p3811_p13 }
  0x52   :  { %3821 = shalt.err (!%p3818_p3)
}
  0x53   :  { %127 = dma.hbm_to_vmem [thread:$0]  %s4887_s7, 256, %s4296_s27, [#allocation15], %s4151_s20, %s4151_s20, %s4152_s21  }
  0x54   :  { %s4158_s3 = smov [#allocation17]   ;;  %s4159_s22 = smov [#allocation20]  }
  0x55   :  { %s144_s28 = sshll.u32 %s4158_s3, 4  ;;  %s163_s24 = sshll.u32 %s4159_s22, 4  ;;  %s145_s28 = int_to_ptr.vmem [resolvable:$true] %s144_s28  ;;  %s4333_s24 = int_to_ptr.vmem [resolvable:$true] %s163_s24 }
  0x56   :  { %s3822_s17 = scalar_lea.hbm %s4889_s9, 16 }
  0x57   :  { %p3823_p4 = scmp.ne.s32.totalorder %s4889_s9, %s3822_s17  ;;  %p3826_p5 = scmp.lt.u32.totalorder %s3822_s17, %s4889_s9 }
  0x59   :  { %p3828_p6 = pnand %p3826_p5, %p3823_p4 }
  0x5b   :  { %3831 = shalt.err (!%p3828_p6)
}
  0x5c   :  { %s3832_s7 = scalar_lea.vmem %s145_s28, 16  ;;  %s3836_s27 = scalar_lea.vmem %s145_s28, 32 }
  0x5d   :  { %p3833_p7 = scmp.ne.s32.totalorder %s145_s28, %s3832_s7  ;;  %p3837_p8 = scmp.lt.s32.totalorder %s145_s28, %s145_s28 }
  0x5e   :  { %p3838_p9 = scmp.lt.s32.totalorder %s3836_s27, %s3832_s7 }
  0x60   :  { %p3839_p10 = por %p3838_p9, %p3837_p8 }
  0x62   :  { %p3840_p11 = pnand %p3839_p10, %p3833_p7 }
  0x64   :  { %3843 = shalt.err (!%p3840_p11)
}
  0x65   :  { %147 = dma.hbm_to_vmem [thread:$0]  %s4889_s9, 16, %s145_s28, [#allocation18]  }
  0x66   :  { %s3844_s29 = scalar_lea.hbm %s4891_s11, 256 }
  0x67   :  { %p3845_p12 = scmp.ne.s32.totalorder %s4891_s11, %s3844_s29  ;;  %p3848_p13 = scmp.lt.u32.totalorder %s3844_s29, %s4891_s11 }
  0x69   :  { %p3850_p0 = pnand %p3848_p13, %p3845_p12 }
  0x6b   :  { %3853 = shalt.err (!%p3850_p0)
}
  0x6c   :  { %s3854_s19 = scalar_lea.vmem %s4333_s24, 256  ;;  %p3859_p2 = scmp.lt.s32.totalorder %s4333_s24, %s4333_s24 }
  0x6d   :  { %p3855_p1 = scmp.ne.s32.totalorder %s4333_s24, %s3854_s19  ;;  %p3860_p3 = scmp.lt.s32.totalorder %s3854_s19, %s3854_s19 }
  0x6f   :  { %p3861_p4 = por %p3860_p3, %p3859_p2 }
  0x71   :  { %p3862_p5 = pnand %p3861_p4, %p3855_p1 }
  0x73   :  { %3865 = shalt.err (!%p3862_p5)
}
  0x74   :  { %169 = dma.hbm_to_vmem [thread:$0]  %s4891_s11, 256, %s4333_s24, [#allocation21], %s4151_s20, %s4151_s20, %s4152_s21  }
  0x75   :  { %s4160_s1 = smov [#allocation23]   ;;  %s4161_s27 = smov [#allocation26]  }
  0x76   :  { %s185_s7 = sshll.u32 %s4160_s1, 4  ;;  %s208_s5 = sshll.u32 %s4161_s27, 4  ;;  %s186_s7 = int_to_ptr.vmem [resolvable:$true] %s185_s7  ;;  %s209_s5 = int_to_ptr.vmem [resolvable:$true] %s208_s5 }
  0x77   :  { %s3866_s22 = scalar_lea.hbm %s4893_s13, 512 }
  0x78   :  { %p3867_p6 = scmp.ne.s32.totalorder %s4893_s13, %s3866_s22  ;;  %p3870_p7 = scmp.lt.u32.totalorder %s3866_s22, %s4893_s13 }
  0x7a   :  { %p3872_p8 = pnand %p3870_p7, %p3867_p6 }
  0x7c   :  { %3875 = shalt.err (!%p3872_p8)
}
  0x7d   :  { %s3876_s11 = scalar_lea.vmem %s186_s7, 512  ;;  %p3881_p10 = scmp.lt.s32.totalorder %s186_s7, %s186_s7 }
  0x7e   :  { %p3877_p9 = scmp.ne.s32.totalorder %s186_s7, %s3876_s11  ;;  %p3882_p11 = scmp.lt.s32.totalorder %s3876_s11, %s3876_s11 }
  0x80   :  { %p3883_p12 = por %p3882_p11, %p3881_p10 }
  0x82   :  { %p3884_p13 = pnand %p3883_p12, %p3877_p9 }
  0x84   :  { %3887 = shalt.err (!%p3884_p13)
}
  0x85   :  { %191 = dma.hbm_to_vmem [thread:$0]  %s4893_s13, 512, %s186_s7, [#allocation24], %s4151_s20, %s4151_s20, %s4152_s21  }
  0x86   :  { %s3888_s28 = scalar_lea.hbm %s4895_s15, 16 }
  0x87   :  { %p3889_p0 = scmp.ne.s32.totalorder %s4895_s15, %s3888_s28  ;;  %p3892_p1 = scmp.lt.u32.totalorder %s3888_s28, %s4895_s15 }
  0x89   :  { %p3894_p2 = pnand %p3892_p1, %p3889_p0 }
  0x8b   :  { %3897 = shalt.err (!%p3894_p2)
}
  0x8c   :  { %s3898_s22 = scalar_lea.vmem %s209_s5, 16  ;;  %s3902_s29 = scalar_lea.vmem %s209_s5, 32 }
  0x8d   :  { %p3899_p3 = scmp.ne.s32.totalorder %s209_s5, %s3898_s22  ;;  %p3903_p4 = scmp.lt.s32.totalorder %s209_s5, %s209_s5 }
  0x8e   :  { %p3904_p5 = scmp.lt.s32.totalorder %s3902_s29, %s3898_s22 }
  0x90   :  { %p3905_p6 = por %p3904_p5, %p3903_p4 }
  0x92   :  { %p3906_p7 = pnand %p3905_p6, %p3899_p3 }
  0x94   :  { %3909 = shalt.err (!%p3906_p7)
}
  0x95   :  { %211 = dma.hbm_to_vmem [thread:$0]  %s4895_s15, 16, %s209_s5, [#allocation27]  }
  0x96   :  { %s4162_s0 = smov [#allocation2]   ;;  %s4905_s24 = sld [smem:[#allocation40_spill]] }
  0x97   :  { %s37_s17 = sshll.u32 %s4162_s0, 4  ;;  %s38_s17 = int_to_ptr.vmem [resolvable:$true] %s37_s17 }
  0x9c   :  { %s3910_s18 = scalar_lea.hbm %s4905_s24, 256 }
  0x9d   :  { %p3911_p8 = scmp.ne.s32.totalorder %s4905_s24, %s3910_s18  ;;  %p3914_p9 = scmp.lt.u32.totalorder %s3910_s18, %s4905_s24 }
  0x9f   :  { %p3916_p10 = pnand %p3914_p9, %p3911_p8 }
  0xa1   :  { %3919 = shalt.err (!%p3916_p10)
}
  0xa2   :  { %s3920_s27 = scalar_lea.vmem %s38_s17, 256  ;;  %p3925_p12 = scmp.lt.s32.totalorder %s38_s17, %s38_s17 }
  0xa3   :  { %p3921_p11 = scmp.ne.s32.totalorder %s38_s17, %s3920_s27  ;;  %p3926_p13 = scmp.lt.s32.totalorder %s3920_s27, %s3920_s27 }
  0xa5   :  { %p3927_p0 = por %p3926_p13, %p3925_p12 }
  0xa7   :  { %p3928_p1 = pnand %p3927_p0, %p3921_p11 }
  0xa9   :  { %3931 = shalt.err (!%p3928_p1)
}
  0xaa   :  { %s4163_s15 = smov 128   ;;  %s4164_s5 = smov 8  }
  0xab   :  { %43 = dma.hbm_to_vmem [thread:$0]  %s4905_s24, 256, %s38_s17, [#allocation3], %s4163_s15, %s4163_s15, %s4164_s5  }
  0xac   :  { %s4165_s22 = smov [#allocation7]   ;;  %s4166_s13 = smov [#allocation10]  }
  0xad   :  { %s61_s29 = sshll.u32 %s4165_s22, 4  ;;  %s85_s7 = sshll.u32 %s4166_s13, 4  ;;  %s62_s29 = int_to_ptr.vmem [resolvable:$true] %s61_s29  ;;  %s86_s7 = int_to_ptr.vmem [resolvable:$true] %s85_s7 }
  0xae   :  { %s3932_s11 = scalar_lea.hbm %s4882_s2, 1024 }
  0xaf   :  { %p3933_p2 = scmp.ne.s32.totalorder %s4882_s2, %s3932_s11  ;;  %p3936_p3 = scmp.lt.u32.totalorder %s3932_s11, %s4882_s2 }
  0xb1   :  { %p3938_p4 = pnand %p3936_p3, %p3933_p2 }
  0xb3   :  { %3941 = shalt.err (!%p3938_p4)
}
  0xb4   :  { %s3942_s17 = scalar_lea.vmem %s62_s29, 1024  ;;  %p3947_p6 = scmp.lt.s32.totalorder %s62_s29, %s62_s29 }
  0xb5   :  { %p3943_p5 = scmp.ne.s32.totalorder %s62_s29, %s3942_s17  ;;  %p3948_p7 = scmp.lt.s32.totalorder %s3942_s17, %s3942_s17 }
  0xb7   :  { %p3949_p8 = por %p3948_p7, %p3947_p6 }
  0xb9   :  { %p3950_p9 = pnand %p3949_p8, %p3943_p5 }
  0xbb   :  { %3953 = shalt.err (!%p3950_p9)
}
  0xbc   :  { %67 = dma.hbm_to_vmem [thread:$0]  %s4882_s2, 1024, %s62_s29, [#allocation6], %s4151_s20, %s4151_s20, %s4152_s21  }
  0xbd   :  { %s3954_s3 = scalar_lea.hbm %s4884_s4, 64 }
  0xbe   :  { %p3955_p10 = scmp.ne.s32.totalorder %s4884_s4, %s3954_s3  ;;  %p3958_p11 = scmp.lt.u32.totalorder %s3954_s3, %s4884_s4 }
  0xc0   :  { %p3960_p12 = pnand %p3958_p11, %p3955_p10 }
  0xc2   :  { %3963 = shalt.err (!%p3960_p12)
}
  0xc3   :  { %s3964_s11 = scalar_lea.vmem %s86_s7, 64  ;;  %p3969_p0 = scmp.lt.s32.totalorder %s86_s7, %s86_s7 }
  0xc4   :  { %p3965_p13 = scmp.ne.s32.totalorder %s86_s7, %s3964_s11  ;;  %p3970_p1 = scmp.lt.s32.totalorder %s3964_s11, %s3964_s11 }
  0xc6   :  { %p3971_p2 = por %p3970_p1, %p3969_p0 }
  0xc8   :  { %p3972_p3 = pnand %p3971_p2, %p3965_p13 }
  0xca   :  { %3975 = shalt.err (!%p3972_p3)
}
  0xcb   :  { %91 = dma.hbm_to_vmem [thread:$0]  %s4884_s4, 64, %s86_s7, [#allocation9], %s4156_s26, %s4156_s26, %s4157_s25  }
  0xcc   :  { %s4167_s21 = smov [#allocation13]   ;;  %s4168_s18 = smov [#allocation16]  }
  0xcd   :  { %s109_s29 = sshll.u32 %s4167_s21, 4  ;;  %s134_s19 = sshll.u32 %s4168_s18, 4  ;;  %s110_s29 = int_to_ptr.vmem [resolvable:$true] %s109_s29  ;;  %s135_s19 = int_to_ptr.vmem [resolvable:$true] %s134_s19 }
  0xce   :  { %s3976_s17 = scalar_lea.hbm %s4886_s6, 64 }
  0xcf   :  { %p3977_p4 = scmp.ne.s32.totalorder %s4886_s6, %s3976_s17  ;;  %p3980_p5 = scmp.lt.u32.totalorder %s3976_s17, %s4886_s6 }
  0xd1   :  { %p3982_p6 = pnand %p3980_p5, %p3977_p4 }
  0xd3   :  { %3985 = shalt.err (!%p3982_p6)
}
  0xd4   :  { %s3986_s4 = scalar_lea.vmem %s110_s29, 64  ;;  %p3991_p8 = scmp.lt.s32.totalorder %s110_s29, %s110_s29 }
  0xd5   :  { %p3987_p7 = scmp.ne.s32.totalorder %s110_s29, %s3986_s4  ;;  %p3992_p9 = scmp.lt.s32.totalorder %s3986_s4, %s3986_s4 }
  0xd7   :  { %p3993_p10 = por %p3992_p9, %p3991_p8 }
  0xd9   :  { %p3994_p11 = pnand %p3993_p10, %p3987_p7 }
  0xdb   :  { %3997 = shalt.err (!%p3994_p11)
}
  0xdc   :  { %115 = dma.hbm_to_vmem [thread:$0]  %s4886_s6, 64, %s110_s29, [#allocation12], %s4156_s26, %s4156_s26, %s4157_s25  }
  0xdd   :  { %s3998_s0 = scalar_lea.hbm %s4888_s8, 16 }
  0xde   :  { %p3999_p12 = scmp.ne.s32.totalorder %s4888_s8, %s3998_s0  ;;  %p4002_p13 = scmp.lt.u32.totalorder %s3998_s0, %s4888_s8 }
  0xe0   :  { %p4004_p0 = pnand %p4002_p13, %p3999_p12 }
  0xe2   :  { %4007 = shalt.err (!%p4004_p0)
}
  0xe3   :  { %s4008_s21 = scalar_lea.vmem %s135_s19, 16  ;;  %s4012_s18 = scalar_lea.vmem %s135_s19, 32 }
  0xe4   :  { %p4009_p1 = scmp.ne.s32.totalorder %s135_s19, %s4008_s21  ;;  %p4013_p2 = scmp.lt.s32.totalorder %s135_s19, %s135_s19 }
  0xe5   :  { %p4014_p3 = scmp.lt.s32.totalorder %s4012_s18, %s4008_s21 }
  0xe7   :  { %p4015_p4 = por %p4014_p3, %p4013_p2 }
  0xe9   :  { %p4016_p5 = pnand %p4015_p4, %p4009_p1 }
  0xeb   :  { %4019 = shalt.err (!%p4016_p5)
}
  0xec   :  { %137 = dma.hbm_to_vmem [thread:$0]  %s4888_s8, 16, %s135_s19, [#allocation15]  }
  0xed   :  { %s4169_s25 = smov [#allocation19]   ;;  %s4170_s9 = smov [#allocation22]  }
  0xee   :  { %s154_s29 = sshll.u32 %s4169_s25, 4  ;;  %s176_s28 = sshll.u32 %s4170_s9, 4  ;;  %s155_s29 = int_to_ptr.vmem [resolvable:$true] %s154_s29  ;;  %s177_s28 = int_to_ptr.vmem [resolvable:$true] %s176_s28 }
  0xef   :  { %s4020_s1 = scalar_lea.hbm %s4890_s10, 16 }
  0xf0   :  { %p4021_p6 = scmp.ne.s32.totalorder %s4890_s10, %s4020_s1  ;;  %p4024_p7 = scmp.lt.u32.totalorder %s4020_s1, %s4890_s10 }
  0xf2   :  { %p4026_p8 = pnand %p4024_p7, %p4021_p6 }
  0xf4   :  { %4029 = shalt.err (!%p4026_p8)
}
  0xf5   :  { %s4030_s8 = scalar_lea.vmem %s155_s29, 16  ;;  %s4034_s19 = scalar_lea.vmem %s155_s29, 32 }
  0xf6   :  { %p4031_p9 = scmp.ne.s32.totalorder %s155_s29, %s4030_s8  ;;  %p4035_p10 = scmp.lt.s32.totalorder %s155_s29, %s155_s29 }
  0xf7   :  { %p4036_p11 = scmp.lt.s32.totalorder %s4034_s19, %s4030_s8 }
  0xf9   :  { %p4037_p12 = por %p4036_p11, %p4035_p10 }
  0xfb   :  { %p4038_p13 = pnand %p4037_p12, %p4031_p9 }
  0xfd   :  { %4041 = shalt.err (!%p4038_p13)
}
  0xfe   :  { %157 = dma.hbm_to_vmem [thread:$0]  %s4890_s10, 16, %s155_s29, [#allocation18]  }
  0xff   :  { %s4042_s30 = scalar_lea.hbm %s4892_s12, 16 }
 0x100   :  { %p4043_p0 = scmp.ne.s32.totalorder %s4892_s12, %s4042_s30  ;;  %p4046_p1 = scmp.lt.u32.totalorder %s4042_s30, %s4892_s12 }
 0x102   :  { %p4048_p2 = pnand %p4046_p1, %p4043_p0 }
 0x104   :  { %4051 = shalt.err (!%p4048_p2)
}
 0x105   :  { %s4052_s18 = scalar_lea.vmem %s177_s28, 16  ;;  %s4056_s6 = scalar_lea.vmem %s177_s28, 32 }
 0x106   :  { %p4053_p3 = scmp.ne.s32.totalorder %s177_s28, %s4052_s18  ;;  %p4057_p4 = scmp.lt.s32.totalorder %s177_s28, %s177_s28 }
 0x107   :  { %p4058_p5 = scmp.lt.s32.totalorder %s4056_s6, %s4052_s18 }
 0x109   :  { %p4059_p6 = por %p4058_p5, %p4057_p4 }
 0x10b   :  { %p4060_p7 = pnand %p4059_p6, %p4053_p3 }
 0x10d   :  { %4063 = shalt.err (!%p4060_p7)
}
 0x10e   :  { %179 = dma.hbm_to_vmem [thread:$0]  %s4892_s12, 16, %s177_s28, [#allocation21]  }
 0x10f   :  { %s4171_s25 = smov [#allocation25]   ;;  %s4172_s9 = smov [#allocation28]  }
 0x110   :  { %s198_s29 = sshll.u32 %s4171_s25, 4  ;;  %s218_s17 = sshll.u32 %s4172_s9, 4  ;;  %s199_s29 = int_to_ptr.vmem [resolvable:$true] %s198_s29  ;;  %s219_s17 = int_to_ptr.vmem [resolvable:$true] %s218_s17 }
 0x111   :  { %s4064_s27 = scalar_lea.hbm %s4894_s14, 16 }
 0x112   :  { %p4065_p8 = scmp.ne.s32.totalorder %s4894_s14, %s4064_s27  ;;  %p4068_p9 = scmp.lt.u32.totalorder %s4064_s27, %s4894_s14 }
 0x114   :  { %p4070_p10 = pnand %p4068_p9, %p4065_p8 }
 0x116   :  { %4073 = shalt.err (!%p4070_p10)
}
 0x117   :  { %s4074_s12 = scalar_lea.vmem %s199_s29, 16  ;;  %s4078_s28 = scalar_lea.vmem %s199_s29, 32 }
 0x118   :  { %p4075_p11 = scmp.ne.s32.totalorder %s199_s29, %s4074_s12  ;;  %p4079_p12 = scmp.lt.s32.totalorder %s199_s29, %s199_s29 }
 0x119   :  { %p4080_p13 = scmp.lt.s32.totalorder %s4078_s28, %s4074_s12 }
 0x11b   :  { %p4081_p0 = por %p4080_p13, %p4079_p12 }
 0x11d   :  { %p4082_p1 = pnand %p4081_p0, %p4075_p11 }
 0x11f   :  { %4085 = shalt.err (!%p4082_p1)
}
 0x120   :  { %201 = dma.hbm_to_vmem [thread:$0]  %s4894_s14, 16, %s199_s29, [#allocation24]  }
 0x121   :  { %s4086_s0 = scalar_lea.hbm %s4896_s16, 16 }
 0x122   :  { %p4087_p2 = scmp.ne.s32.totalorder %s4896_s16, %s4086_s0  ;;  %p4090_p3 = scmp.lt.u32.totalorder %s4086_s0, %s4896_s16 }
 0x124   :  { %p4092_p4 = pnand %p4090_p3, %p4087_p2 }
 0x126   :  { %4095 = shalt.err (!%p4092_p4)
}
 0x127   :  { %s4096_s21 = scalar_lea.vmem %s219_s17, 16  ;;  %s4100_s18 = scalar_lea.vmem %s219_s17, 32 }
 0x128   :  { %p4097_p5 = scmp.ne.s32.totalorder %s219_s17, %s4096_s21  ;;  %p4101_p6 = scmp.lt.s32.totalorder %s219_s17, %s219_s17 }
 0x129   :  { %p4102_p7 = scmp.lt.s32.totalorder %s4100_s18, %s4096_s21 }
 0x12b   :  { %p4103_p8 = por %p4102_p7, %p4101_p6 }
 0x12d   :  { %p4104_p9 = pnand %p4103_p8, %p4097_p5 }
 0x12f   :  { %4107 = shalt.err (!%p4104_p9)
}
 0x130   :  { %221 = dma.hbm_to_vmem [thread:$0]  %s4896_s16, 16, %s219_s17, [#allocation27]  }
 0x131   :  { %4130 = dma.done.wait [#allocation3], 256  }
 0x132   :  { %4131 = vsyncadd [#allocation3], 4294967040 }
 0x133   :  { %4132 = dma.done.wait [#allocation6], 2048  }
 0x134   :  { %4133 = vsyncadd [#allocation6], 4294965248 }
 0x135   :  { %4134 = dma.done.wait [#allocation9], 1088  }
 0x136   :  { %4135 = vsyncadd [#allocation9], 4294966208 }
 0x137   :  { %4136 = dma.done.wait [#allocation12], 128  }
 0x138   :  { %4137 = vsyncadd [#allocation12], 4294967168 }
 0x139   :  { %4138 = dma.done.wait [#allocation15], 272  }
 0x13a   :  { %4139 = vsyncadd [#allocation15], 4294967024 }
 0x13b   :  { %4140 = dma.done.wait [#allocation18], 32  }
 0x13c   :  { %4141 = vsyncadd [#allocation18], 4294967264 }
 0x13d   :  { %4142 = dma.done.wait [#allocation21], 272  }
 0x13e   :  { %4143 = vsyncadd [#allocation21], 4294967024 }
 0x13f   :  { %4144 = dma.done.wait [#allocation24], 528  }
 0x140   :  { %4145 = vsyncadd [#allocation24], 4294966768 }
 0x141   :  { %4146 = dma.done.wait [#allocation27], 32  }
 0x142   :  { %4147 = vsyncadd [#allocation27], 4294967264  ;;  %v4173_v0 = vmov 0.0   ;;  %vm4174_vm0 = vmmov 0   ;;  %v3662_v1 = vld [vmem:[#allocation5] sm:$0xff]   ;;  %v3663_v2 = vld [vmem:[#allocation5 + $0x10] sm:$0xff]  }
 0x143   :  { %3280 = vmatprep.subr.bf16.mxu0 %v4173_v0  ;;  %3288 = vmatprep.subr.bf16.mxu1 %v4173_v0  ;;  %v3664_v3 = vld [vmem:[#allocation5 + $0x8] sm:$0xff]   ;;  %v3665_v4 = vld [vmem:[#allocation5 + $0x18] sm:$0xff]   ;;  %v274_v5 = vld [vmem:[#allocation2] sm:$0xff]  ;;  %vm366_vm1 = vcmask 261120   ;;  %vm1537_vm2 = vcmask 64512   ;;  %vm2013_vm3 = vcmask 1043456  }
 0x144   :  { %3284 = vmatprep.mubr.msk.bf16.mxu0 %vm4174_vm0, %v4173_v0  ;;  %3292 = vmatprep.mubr.msk.bf16.mxu1 %vm4174_vm0, %v4173_v0  ;;  %v4522_v6 = vpack.c.bf16 %v274_v5, %v274_v5  ;;  %v3666_v7 = vld [vmem:[#allocation5 + $0x20] sm:$0xff]   ;;  %v3667_v8 = vld [vmem:[#allocation5 + $0x30] sm:$0xff]   ;;  %v3668_v9 = vld [vmem:[#allocation5 + $0x28] sm:$0xff]   ;;  %vm2935_vm4 = vcmask 523264   ;;  %s4175_s16 = smov [#allocation29]  }
 0x145   :  { %3281 = vmatpush3.bf16.msra.mxu0 %v3662_v1  ;;  %3289 = vmatpush3.bf16.msra.mxu1 %v3663_v2  ;;  %v3669_v10 = vld [vmem:[#allocation5 + $0x38] sm:$0xff]   ;;  %v3670_v13 = vld [vmem:[#allocation7] sm:$0xff]   ;;  %v3671_v14 = vld [vmem:[#allocation7 + $0x10] sm:$0xff]   ;;  %s3033_s10 = sshll.u32 %s4175_s16, 4  ;;  %s3034_s10 = int_to_ptr.vmem [resolvable:$true] %s3033_s10 }
 0x146   :  { %3282 = vmatprep.subr.bf16.mxu0 %v4173_v0  ;;  %3290 = vmatprep.subr.bf16.mxu1 %v4173_v0  ;;  %v275_v11 = vld [vmem:[#allocation2 + $0x8] sm:$0xff]  ;;  %v3672_v15 = vld [vmem:[#allocation7 + $0x8] sm:$0xff]   ;;  %v3674_v17 = vld [vmem:[#allocation7 + $0x20] sm:$0xff]   ;;  %s4108_s26 = scalar_lea.vmem %s3034_s10, 256  ;;  %p4113_p11 = scmp.lt.s32.totalorder %s3034_s10, %s3034_s10 }
 0x147   :  { %v4548_v12 = vpack.c.bf16 %v275_v11, %v275_v11  ;;  %v3673_v16 = vld [vmem:[#allocation7 + $0x18] sm:$0xff]   ;;  %v3675_v18 = vld [vmem:[#allocation7 + $0x30] sm:$0xff]   ;;  %v3676_v19 = vld [vmem:[#allocation7 + $0x28] sm:$0xff]   ;;  %p4109_p10 = scmp.ne.s32.totalorder %s3034_s10, %s4108_s26  ;;  %p4114_p12 = scmp.lt.s32.totalorder %s4108_s26, %s4108_s26 }
 0x148   :  { %v3677_v20 = vld [vmem:[#allocation7 + $0x38] sm:$0xff]   ;;  %v3678_v21 = vld [vmem:[#allocation8] sm:$0xff]   ;;  %v3679_v22 = vld [vmem:[#allocation8 + $0x10] sm:$0xff]  }
 0x149   :  { %3283 = vmatpush3.bf16.msra.mxu0 %v3664_v3  ;;  %3291 = vmatpush3.bf16.msra.mxu1 %v3665_v4  ;;  %v3680_v23 = vld [vmem:[#allocation8 + $0x8] sm:$0xff]   ;;  %v3681_v24 = vld [vmem:[#allocation8 + $0x18] sm:$0xff]   ;;  %v3682_v25 = vld [vmem:[#allocation8 + $0x20] sm:$0xff]   ;;  %p4115_p13 = por %p4114_p12, %p4113_p11 }
 0x14a   :  { %3296 = vmatprep.subr.bf16.mxu0 %v4173_v0  ;;  %3304 = vmatprep.subr.bf16.mxu1 %v4173_v0  ;;  %v3683_v26 = vld [vmem:[#allocation8 + $0x30] sm:$0xff]   ;;  %v3684_v27 = vld [vmem:[#allocation8 + $0x28] sm:$0xff]   ;;  %v3685_v28 = vld [vmem:[#allocation8 + $0x38] sm:$0xff]  }
 0x14b   :  { %v3073_v61 = vld [vmem:[#allocation11] ss:$0 sm:$0xff]  ;;  %v3074_v62 = vld [vmem:[#allocation11 + $0x1] ss:$0 sm:$0xff]  ;;  %p4116_p0 = pnand %p4115_p13, %p4109_p10 }
 0x14c   :  { %3285 = vmatmul.mubr.msk.bf16.vlgmr.msra.gmra.mrb[0].mxu0 %vm366_vm1, %v4522_v6  ;;  %3293 = vmatmul.mubr.msk.bf16.vlgmr.msra.gmra.mrb[0].mxu1 %vm366_vm1, %v4522_v6 }
 0x14d   :  { %3297 = vmatpush3.bf16.msra.mxu0 %v3666_v7  ;;  %3305 = vmatpush3.bf16.msra.mxu1 %v3667_v8 }
 0x14e   :  { %3298 = vmatprep.subr.bf16.mxu0 %v4173_v0  ;;  %3306 = vmatprep.subr.bf16.mxu1 %v4173_v0 }
 0x14f   :  { %3300 = vmatprep.mubr.msk.bf16.mxu0 %vm4174_vm0, %v4173_v0  ;;  %3308 = vmatprep.mubr.msk.bf16.mxu1 %vm4174_vm0, %v4173_v0 }
 0x151   :  { %3299 = vmatpush3.bf16.msra.mxu0 %v3668_v9  ;;  %3307 = vmatpush3.bf16.msra.mxu1 %v3669_v10 }
 0x152   :  { %3312 = vmatprep.subr.bf16.mxu0 %v4173_v0  ;;  %3320 = vmatprep.subr.bf16.mxu1 %v4173_v0 }
 0x154   :  { %3301 = vmatmul.mubr.msk.bf16.vlgmr.msra.gmra.mrb[4].mxu0 %vm366_vm1, %v4522_v6  ;;  %3309 = vmatmul.mubr.msk.bf16.vlgmr.msra.gmra.mrb[4].mxu1 %vm366_vm1, %v4522_v6 }
 0x155   :  { %3313 = vmatpush3.bf16.msra.mxu0 %v3662_v1  ;;  %3321 = vmatpush3.bf16.msra.mxu1 %v3663_v2 }
 0x156   :  { %3314 = vmatprep.subr.bf16.mxu0 %v4173_v0  ;;  %3322 = vmatprep.subr.bf16.mxu1 %v4173_v0 }
 0x157   :  { %3316 = vmatprep.mubr.msk.bf16.mxu0 %vm4174_vm0, %v4173_v0  ;;  %3324 = vmatprep.mubr.msk.bf16.mxu1 %vm4174_vm0, %v4173_v0 }
 0x159   :  { %3315 = vmatpush3.bf16.msra.mxu0 %v3664_v3  ;;  %3323 = vmatpush3.bf16.msra.mxu1 %v3665_v4 }
 0x15a   :  { %3328 = vmatprep.subr.bf16.mxu0 %v4173_v0  ;;  %3336 = vmatprep.subr.bf16.mxu1 %v4173_v0 }
 0x15c   :  { %3317 = vmatmul.mubr.msk.bf16.vlgmr.msra.gmra.mrb[8].mxu0 %vm366_vm1, %v4548_v12  ;;  %3325 = vmatmul.mubr.msk.bf16.vlgmr.msra.gmra.mrb[8].mxu1 %vm366_vm1, %v4548_v12 }
 0x15d   :  { %3329 = vmatpush3.bf16.msra.mxu0 %v3666_v7  ;;  %3337 = vmatpush3.bf16.msra.mxu1 %v3667_v8 }
 0x15e   :  { %3330 = vmatprep.subr.bf16.mxu0 %v4173_v0  ;;  %3338 = vmatprep.subr.bf16.mxu1 %v4173_v0 }
 0x15f   :  { %3332 = vmatprep.mubr.msk.bf16.mxu0 %vm4174_vm0, %v4173_v0  ;;  %3340 = vmatprep.mubr.msk.bf16.mxu1 %vm4174_vm0, %v4173_v0 }
 0x161   :  { %3331 = vmatpush3.bf16.msra.mxu0 %v3668_v9  ;;  %3339 = vmatpush3.bf16.msra.mxu1 %v3669_v10  ;;  %v3053_v10 = vld [vmem:[#allocation10] ss:$0 sm:$0xff] }
 0x162   :  { %3344 = vmatprep.subr.bf16.mxu0 %v4173_v0  ;;  %3352 = vmatprep.subr.bf16.mxu1 %v4173_v0 }
 0x164   :  { %3333 = vmatmul.mubr.msk.bf16.vlgmr.msra.gmra.mrb[12].mxu0 %vm366_vm1, %v4548_v12  ;;  %3341 = vmatmul.mubr.msk.bf16.vlgmr.msra.gmra.mrb[12].mxu1 %vm366_vm1, %v4548_v12 }
 0x165   :  { %3345 = vmatpush3.bf16.msra.mxu0 %v3670_v13  ;;  %3353 = vmatpush3.bf16.msra.mxu1 %v3671_v14 }
 0x166   :  { %3346 = vmatprep.subr.bf16.mxu0 %v4173_v0  ;;  %3354 = vmatprep.subr.bf16.mxu1 %v4173_v0 }
 0x167   :  { %3348 = vmatprep.mubr.msk.bf16.mxu0 %vm4174_vm0, %v4173_v0  ;;  %3356 = vmatprep.mubr.msk.bf16.mxu1 %vm4174_vm0, %v4173_v0 }
 0x169   :  { %3347 = vmatpush3.bf16.msra.mxu0 %v3672_v15  ;;  %3355 = vmatpush3.bf16.msra.mxu1 %v3673_v16 }
 0x16a   :  { %3360 = vmatprep.subr.bf16.mxu0 %v4173_v0  ;;  %3368 = vmatprep.subr.bf16.mxu1 %v4173_v0 }
 0x16c   :  { %3349 = vmatmul.mubr.msk.bf16.vlgmr.msra.gmra.mrb[16].mxu0 %vm366_vm1, %v4522_v6  ;;  %3357 = vmatmul.mubr.msk.bf16.vlgmr.msra.gmra.mrb[16].mxu1 %vm366_vm1, %v4522_v6 }
 0x16d   :  { %3361 = vmatpush3.bf16.msra.mxu0 %v3674_v17  ;;  %3369 = vmatpush3.bf16.msra.mxu1 %v3675_v18 }
 0x16e   :  { %3362 = vmatprep.subr.bf16.mxu0 %v4173_v0  ;;  %3370 = vmatprep.subr.bf16.mxu1 %v4173_v0 }
 0x16f   :  { %3364 = vmatprep.mubr.msk.bf16.mxu0 %vm4174_vm0, %v4173_v0  ;;  %3372 = vmatprep.mubr.msk.bf16.mxu1 %vm4174_vm0, %v4173_v0 }
 0x171   :  { %3363 = vmatpush3.bf16.msra.mxu0 %v3676_v19  ;;  %3371 = vmatpush3.bf16.msra.mxu1 %v3677_v20 }
 0x172   :  { %3376 = vmatprep.subr.bf16.mxu0 %v4173_v0  ;;  %3384 = vmatprep.subr.bf16.mxu1 %v4173_v0 }
 0x174   :  { %3365 = vmatmul.mubr.msk.bf16.vlgmr.msra.gmra.mrb[20].mxu0 %vm366_vm1, %v4522_v6  ;;  %3373 = vmatmul.mubr.msk.bf16.vlgmr.msra.gmra.mrb[20].mxu1 %vm366_vm1, %v4522_v6 }
 0x175   :  { %3377 = vmatpush3.bf16.msra.mxu0 %v3670_v13  ;;  %3385 = vmatpush3.bf16.msra.mxu1 %v3671_v14  ;;  %v3054_v13 = vld [vmem:[#allocation10 + $0x1] ss:$0 sm:$0xff] }
 0x176   :  { %3378 = vmatprep.subr.bf16.mxu0 %v4173_v0  ;;  %3386 = vmatprep.subr.bf16.mxu1 %v4173_v0 }
 0x177   :  { %3380 = vmatprep.mubr.msk.bf16.mxu0 %vm4174_vm0, %v4173_v0  ;;  %3388 = vmatprep.mubr.msk.bf16.mxu1 %vm4174_vm0, %v4173_v0 }
 0x179   :  { %3379 = vmatpush3.bf16.msra.mxu0 %v3672_v15  ;;  %3387 = vmatpush3.bf16.msra.mxu1 %v3673_v16  ;;  %v3075_v16 = vld [vmem:[#allocation11 + $0x2] ss:$0 sm:$0xff] }
 0x17a   :  { %3392 = vmatprep.subr.bf16.mxu0 %v4173_v0  ;;  %3400 = vmatprep.subr.bf16.mxu1 %v4173_v0 }
 0x17c   :  { %3381 = vmatmul.mubr.msk.bf16.vlgmr.msra.gmra.mrb[24].mxu0 %vm366_vm1, %v4548_v12  ;;  %3389 = vmatmul.mubr.msk.bf16.vlgmr.msra.gmra.mrb[24].mxu1 %vm366_vm1, %v4548_v12 }
 0x17d   :  { %3393 = vmatpush3.bf16.msra.mxu0 %v3674_v17  ;;  %3401 = vmatpush3.bf16.msra.mxu1 %v3675_v18  ;;  %v3076_v18 = vld [vmem:[#allocation11 + $0x3] ss:$0 sm:$0xff] }
 0x17e   :  { %3394 = vmatprep.subr.bf16.mxu0 %v4173_v0  ;;  %3402 = vmatprep.subr.bf16.mxu1 %v4173_v0 }
 0x17f   :  { %3396 = vmatprep.mubr.msk.bf16.mxu0 %vm4174_vm0, %v4173_v0  ;;  %3404 = vmatprep.mubr.msk.bf16.mxu1 %vm4174_vm0, %v4173_v0 }
 0x181   :  { %3395 = vmatpush3.bf16.msra.mxu0 %v3676_v19  ;;  %3403 = vmatpush3.bf16.msra.mxu1 %v3677_v20 }
 0x182   :  { %3408 = vmatprep.subr.bf16.mxu0 %v4173_v0  ;;  %3416 = vmatprep.subr.bf16.mxu1 %v4173_v0 }
 0x184   :  { %3397 = vmatmul.mubr.msk.bf16.vlgmr.msra.gmra.mrb[28].mxu0 %vm366_vm1, %v4548_v12  ;;  %3405 = vmatmul.mubr.msk.bf16.vlgmr.msra.gmra.mrb[28].mxu1 %vm366_vm1, %v4548_v12 }
 0x185   :  { %3409 = vmatpush3.bf16.msra.mxu0 %v3678_v21  ;;  %3412 = vmatprep.mubr.msk.bf16.mxu0 %vm4174_vm0, %v4173_v0 }
 0x186   :  { %3410 = vmatprep.subr.bf16.mxu0 %v4173_v0  ;;  %3420 = vmatprep.mubr.msk.bf16.mxu1 %vm4174_vm0, %v4173_v0 }
 0x187   :  { %3417 = vmatpush3.bf16.msra.mxu1 %v3679_v22 }
 0x188   :  { %3418 = vmatprep.subr.bf16.mxu1 %v4173_v0 }
 0x189   :  { %3411 = vmatpush3.bf16.msra.mxu0 %v3680_v23 }
 0x18a   :  { %3424 = vmatprep.subr.bf16.mxu0 %v4173_v0 }
 0x18b   :  { %3419 = vmatpush3.bf16.msra.mxu1 %v3681_v24 }
 0x18c   :  { %3413 = vmatmul.mubr.msk.bf16.vlgmr.msra.gmra.mrb[32].mxu0 %vm366_vm1, %v4522_v6  ;;  %3432 = vmatprep.subr.bf16.mxu1 %v4173_v0 }
 0x18d   :  { %3425 = vmatpush3.bf16.msra.mxu0 %v3682_v25  ;;  %3428 = vmatprep.mubr.msk.bf16.mxu0 %vm4174_vm0, %v4173_v0 }
 0x18e   :  { %3421 = vmatmul.mubr.msk.bf16.vlgmr.msra.gmra.mrb[32].mxu1 %vm366_vm1, %v4522_v6  ;;  %3426 = vmatprep.subr.bf16.mxu0 %v4173_v0 }
 0x18f   :  { %3433 = vmatpush3.bf16.msra.mxu1 %v3683_v26  ;;  %3436 = vmatprep.mubr.msk.bf16.mxu1 %vm4174_vm0, %v4173_v0 }
 0x190   :  { %3434 = vmatprep.subr.bf16.mxu1 %v4173_v0 }
 0x191   :  { %3427 = vmatpush3.bf16.msra.mxu0 %v3684_v27 }
 0x192   :  { %3440 = vmatprep.subr.bf16.mxu0 %v4173_v0 }
 0x193   :  { %3435 = vmatpush3.bf16.msra.mxu1 %v3685_v28 }
 0x194   :  { %3429 = vmatmul.mubr.msk.bf16.vlgmr.msra.gmra.mrb[36].mxu0 %vm366_vm1, %v4522_v6  ;;  %3448 = vmatprep.subr.bf16.mxu1 %v4173_v0 }
 0x195   :  { %3441 = vmatpush3.bf16.msra.mxu0 %v3678_v21  ;;  %3444 = vmatprep.mubr.msk.bf16.mxu0 %vm4174_vm0, %v4173_v0 }
 0x196   :  { %3437 = vmatmul.mubr.msk.bf16.vlgmr.msra.gmra.mrb[36].mxu1 %vm366_vm1, %v4522_v6  ;;  %3442 = vmatprep.subr.bf16.mxu0 %v4173_v0 }
 0x197   :  { %3449 = vmatpush3.bf16.msra.mxu1 %v3679_v22  ;;  %3452 = vmatprep.mubr.msk.bf16.mxu1 %vm4174_vm0, %v4173_v0 }
 0x198   :  { %3450 = vmatprep.subr.bf16.mxu1 %v4173_v0 }
 0x199   :  { %3443 = vmatpush3.bf16.msra.mxu0 %v3680_v23 }
 0x19a   :  { %3456 = vmatprep.subr.bf16.mxu0 %v4173_v0 }
 0x19b   :  { %3451 = vmatpush3.bf16.msra.mxu1 %v3681_v24 }
 0x19c   :  { %3445 = vmatmul.mubr.msk.bf16.vlgmr.msra.gmra.mrb[40].mxu0 %vm366_vm1, %v4548_v12  ;;  %3464 = vmatprep.subr.bf16.mxu1 %v4173_v0 }
 0x19d   :  { %3457 = vmatpush3.bf16.msra.mxu0 %v3682_v25  ;;  %3460 = vmatprep.mubr.msk.bf16.mxu0 %vm4174_vm0, %v4173_v0 }
 0x19e   :  { %3453 = vmatmul.mubr.msk.bf16.vlgmr.msra.gmra.mrb[40].mxu1 %vm366_vm1, %v4548_v12  ;;  %3458 = vmatprep.subr.bf16.mxu0 %v4173_v0 }
 0x19f   :  { %3465 = vmatpush3.bf16.msra.mxu1 %v3683_v26  ;;  %3468 = vmatprep.mubr.msk.bf16.mxu1 %vm4174_vm0, %v4173_v0 }
 0x1a0   :  { %3466 = vmatprep.subr.bf16.mxu1 %v4173_v0 }
 0x1a1   :  { %3459 = vmatpush3.bf16.msra.mxu0 %v3684_v27 }
 0x1a2   :  { %3472 = vmatprep.subr.bf16.mxu0 %v4173_v0 }
 0x1a3   :  { %3467 = vmatpush3.bf16.msra.mxu1 %v3685_v28 }
 0x1a4   :  { %3461 = vmatmul.mubr.msk.bf16.vlgmr.msra.gmra.mrb[44].mxu0 %vm366_vm1, %v4548_v12  ;;  %3478 = vmatprep.subr.bf16.mxu1 %v4173_v0 }
 0x1a5   :  { %3474 = vmatprep.mubr.msk.bf16.mxu0 %vm4174_vm0, %v4173_v0 }
 0x1a6   :  { %3469 = vmatmul.mubr.msk.bf16.vlgmr.msra.gmra.mrb[44].mxu1 %vm366_vm1, %v4548_v12 }
 0x1a7   :  { %3480 = vmatprep.mubr.msk.bf16.mxu1 %vm4174_vm0, %v4173_v0 }
 0x21f   :  { %v404_v29 = vpop.f32.mrb[0].mxu0  ;;  %v456_v31 = vpop.f32.mrb[0].mxu1 }
 0x220   :  { %v3286_v30 = vpop.f32.mrb[1].mxu0  ;;  %v3294_v33 = vpop.f32.mrb[1].mxu1  ;;  %v405_v17 = vadd.f32 %v3053_v10, %v404_v29  ;;  %v457_v19 = vadd.f32 %v3054_v13, %v456_v31  ;;  %v3055_v29 = vld [vmem:[#allocation10 + $0x2] ss:$0 sm:$0xff] }
 0x221   :  { %v407_v32 = vpop.f32.mrb[2].mxu0  ;;  %v459_v35 = vpop.f32.mrb[2].mxu1 }
 0x222   :  { %v3287_v34 = vpop.f32.mrb[3].mxu0  ;;  %v3295_v36 = vpop.f32.mrb[3].mxu1  ;;  %v1521_v27 = vpack.c.bf16 %v405_v17, %v405_v17  ;;  %v1522_v33 = vpack.c.bf16 %v457_v19, %v457_v19  ;;  %v3094_v17 = vld [vmem:[#allocation13 + $0x1] ss:$0 sm:$0xff] }
 0x223   :  { %v3056_v36 = vld [vmem:[#allocation10 + $0x3] ss:$0 sm:$0xff] }
 0x227   :  { %v4668_v37 = vpop.f32.mrb[4].mxu0  ;;  %v4670_v39 = vpop.f32.mrb[4].mxu1 }
 0x228   :  { %v3302_v38 = vpop.f32.mrb[5].mxu0  ;;  %v3310_v41 = vpop.f32.mrb[5].mxu1 }
 0x229   :  { %v511_v40 = vpop.f32.mrb[6].mxu0  ;;  %v563_v43 = vpop.f32.mrb[6].mxu1  ;;  %v561_v41 = vadd.f32 %v3056_v36, %v4670_v39 }
 0x22a   :  { %v3303_v42 = vpop.f32.mrb[7].mxu0  ;;  %v3311_v44 = vpop.f32.mrb[7].mxu1  ;;  %v509_v40 = vadd.f32 %v3055_v29, %v4668_v37 }
 0x22f   :  { %v4672_v45 = vpop.f32.mrb[8].mxu0  ;;  %v4674_v47 = vpop.f32.mrb[8].mxu1 }
 0x230   :  { %v3318_v46 = vpop.f32.mrb[9].mxu0  ;;  %v3326_v49 = vpop.f32.mrb[9].mxu1 }
 0x231   :  { %v606_v48 = vpop.f32.mrb[10].mxu0  ;;  %v646_v51 = vpop.f32.mrb[10].mxu1 }
 0x232   :  { %v3319_v50 = vpop.f32.mrb[11].mxu0  ;;  %v3327_v52 = vpop.f32.mrb[11].mxu1 }
 0x233   :  { %v1523_v50 = vpack.c.bf16 %v509_v40, %v509_v40 }
 0x237   :  { %v4676_v53 = vpop.f32.mrb[12].mxu0  ;;  %v4678_v55 = vpop.f32.mrb[12].mxu1 }
 0x238   :  { %v3334_v54 = vpop.f32.mrb[13].mxu0  ;;  %v3342_v57 = vpop.f32.mrb[13].mxu1 }
 0x239   :  { %v686_v56 = vpop.f32.mrb[14].mxu0  ;;  %v726_v59 = vpop.f32.mrb[14].mxu1 }
 0x23a   :  { %v3335_v58 = vpop.f32.mrb[15].mxu0  ;;  %v3343_v60 = vpop.f32.mrb[15].mxu1  ;;  %v1524_v56 = vpack.c.bf16 %v561_v41, %v561_v41 }
 0x23b   :  { %v604_v60 = vadd.f32 %v3053_v10, %v4672_v45 }
 0x23f   :  { %v803_v63 = vpop.f32.mrb[16].mxu0  ;;  %v855_v2 = vpop.f32.mrb[16].mxu1 }
 0x240   :  { %v804_v1 = vadd.f32 %v3073_v61, %v803_v63  ;;  %v3350_v3 = vpop.f32.mrb[17].mxu0  ;;  %v856_v4 = vadd.f32 %v3074_v62, %v855_v2  ;;  %v3358_v6 = vpop.f32.mrb[17].mxu1 }
 0x241   :  { %v806_v5 = vpop.f32.mrb[18].mxu0  ;;  %v858_v9 = vpop.f32.mrb[18].mxu1 }
 0x242   :  { %v1529_v7 = vpack.c.bf16 %v804_v1, %v804_v1  ;;  %v3351_v8 = vpop.f32.mrb[19].mxu0  ;;  %v1530_v11 = vpack.c.bf16 %v856_v4, %v856_v4  ;;  %v3359_v12 = vpop.f32.mrb[19].mxu1  ;;  %v1525_v5 = vpack.c.bf16 %v604_v60, %v604_v60 }
 0x244   :  { %v1542_v14 = vsel %vm1537_vm2, %v1529_v7, 0  ;;  %v1588_v15 = vsel %vm1537_vm2, %v1530_v11, 0 }
 0x245   :  { %3473 = vmatpush3.bf16.xpose.msra.mxu0 %v1542_v14  ;;  %3479 = vmatpush3.bf16.xpose.msra.mxu1 %v1588_v15  ;;  %v724_v14 = vadd.f32 %v3056_v36, %v4678_v55 }
 0x246   :  { %3484 = vmatprep.subr.bf16.mxu0 %v4173_v0  ;;  %3490 = vmatprep.subr.bf16.mxu1 %v4173_v0 }
 0x247   :  { %v907_v20 = vpop.f32.mrb[20].mxu0  ;;  %v959_v22 = vpop.f32.mrb[20].mxu1 }
 0x248   :  { %v908_v21 = vadd.f32 %v3075_v16, %v907_v20  ;;  %v3366_v23 = vpop.f32.mrb[21].mxu0  ;;  %v960_v24 = vadd.f32 %v3076_v18, %v959_v22  ;;  %v3374_v26 = vpop.f32.mrb[21].mxu1 }
 0x249   :  { %v910_v25 = vpop.f32.mrb[22].mxu0  ;;  %v962_v32 = vpop.f32.mrb[22].mxu1 }
 0x24a   :  { %v1531_v28 = vpack.c.bf16 %v908_v21, %v908_v21  ;;  %v3367_v30 = vpop.f32.mrb[23].mxu0  ;;  %v1532_v34 = vpack.c.bf16 %v960_v24, %v960_v24  ;;  %v3375_v35 = vpop.f32.mrb[23].mxu1 }
 0x24c   :  { %v1634_v31 = vsel %vm1537_vm2, %v1531_v28, 0  ;;  %3475 = vmatmul.mubr.msk.bf16.vlgmr.msra.gmra.mrb[48].mxu0 %vm1537_vm2, %v1521_v27  ;;  %v1680_v38 = vsel %vm1537_vm2, %v1532_v34, 0  ;;  %3481 = vmatmul.mubr.msk.bf16.vlgmr.msra.gmra.mrb[48].mxu1 %vm1537_vm2, %v1522_v33 }
 0x24d   :  { %3485 = vmatpush3.bf16.xpose.msra.mxu0 %v1634_v31  ;;  %3491 = vmatpush3.bf16.xpose.msra.mxu1 %v1680_v38 }
 0x24e   :  { %3486 = vmatprep.mubr.msk.bf16.mxu0 %vm4174_vm0, %v4173_v0  ;;  %3492 = vmatprep.mubr.msk.bf16.mxu1 %vm4174_vm0, %v4173_v0 }
 0x24f   :  { %v999_v42 = vpop.f32.mrb[24].mxu0  ;;  %3496 = vmatprep.subr.bf16.mxu0 %v4173_v0  ;;  %v1039_v44 = vpop.f32.mrb[24].mxu1  ;;  %3502 = vmatprep.subr.bf16.mxu1 %v4173_v0 }
 0x250   :  { %v1000_v43 = vadd.f32 %v3073_v61, %v999_v42  ;;  %v3382_v46 = vpop.f32.mrb[25].mxu0  ;;  %v1040_v48 = vadd.f32 %v3074_v62, %v1039_v44  ;;  %v3390_v37 = vpop.f32.mrb[25].mxu1  ;;  %v644_v61 = vadd.f32 %v3054_v13, %v4674_v47  ;;  %v684_v13 = vadd.f32 %v3055_v29, %v4676_v53  ;;  %v3093_v53 = vld [vmem:[#allocation13] ss:$0 sm:$0xff] }
 0x251   :  { %v1002_v49 = vpop.f32.mrb[26].mxu0  ;;  %v1042_v54 = vpop.f32.mrb[26].mxu1 }
 0x252   :  { %v1533_v51 = vpack.c.bf16 %v1000_v43, %v1000_v43  ;;  %v3383_v52 = vpop.f32.mrb[27].mxu0  ;;  %v1534_v39 = vpack.c.bf16 %v1040_v48, %v1040_v48  ;;  %v3391_v57 = vpop.f32.mrb[27].mxu1  ;;  %v1526_v9 = vpack.c.bf16 %v644_v61, %v644_v61  ;;  %v1527_v15 = vpack.c.bf16 %v684_v13, %v684_v13 }
 0x254   :  { %v1726_v58 = vsel %vm1537_vm2, %v1533_v51, 0  ;;  %3487 = vmatmul.mubr.msk.bf16.vlgmr.msra.gmra.mrb[52].mxu0 %vm1537_vm2, %v1523_v50  ;;  %v1772_v59 = vsel %vm1537_vm2, %v1534_v39, 0  ;;  %3493 = vmatmul.mubr.msk.bf16.vlgmr.msra.gmra.mrb[52].mxu1 %vm1537_vm2, %v1524_v56 }
 0x255   :  { %3497 = vmatpush3.bf16.xpose.msra.mxu0 %v1726_v58  ;;  %3503 = vmatpush3.bf16.xpose.msra.mxu1 %v1772_v59 }
 0x256   :  { %3498 = vmatprep.mubr.msk.bf16.mxu0 %vm4174_vm0, %v4173_v0  ;;  %3504 = vmatprep.mubr.msk.bf16.mxu1 %vm4174_vm0, %v4173_v0 }
 0x257   :  { %v1079_v62 = vpop.f32.mrb[28].mxu0  ;;  %3508 = vmatprep.subr.bf16.mxu0 %v4173_v0  ;;  %v1119_v1 = vpop.f32.mrb[28].mxu1  ;;  %3514 = vmatprep.subr.bf16.mxu1 %v4173_v0 }
 0x258   :  { %v1080_v63 = vadd.f32 %v3075_v16, %v1079_v62  ;;  %v3398_v2 = vpop.f32.mrb[29].mxu0  ;;  %v1120_v3 = vadd.f32 %v3076_v18, %v1119_v1  ;;  %v3406_v45 = vpop.f32.mrb[29].mxu1  ;;  %v1528_v16 = vpack.c.bf16 %v724_v14, %v724_v14 }
 0x259   :  { %v1082_v4 = vpop.f32.mrb[30].mxu0  ;;  %v1122_v8 = vpop.f32.mrb[30].mxu1 }
 0x25a   :  { %v1535_v6 = vpack.c.bf16 %v1080_v63, %v1080_v63  ;;  %v3399_v7 = vpop.f32.mrb[31].mxu0  ;;  %v1536_v47 = vpack.c.bf16 %v1120_v3, %v1120_v3  ;;  %v3407_v10 = vpop.f32.mrb[31].mxu1 }
 0x25c   :  { %v1818_v11 = vsel %vm1537_vm2, %v1535_v6, 0  ;;  %3499 = vmatmul.mubr.msk.bf16.vlgmr.msra.gmra.mrb[56].mxu0 %vm1537_vm2, %v1525_v5  ;;  %v1864_v12 = vsel %vm1537_vm2, %v1536_v47, 0  ;;  %3505 = vmatmul.mubr.msk.bf16.vlgmr.msra.gmra.mrb[56].mxu1 %vm1537_vm2, %v1526_v9 }
 0x25d   :  { %3509 = vmatpush3.bf16.xpose.msra.mxu0 %v1818_v11  ;;  %3515 = vmatpush3.bf16.xpose.msra.mxu1 %v1864_v12 }
 0x25e   :  { %3510 = vmatprep.mubr.msk.bf16.mxu0 %vm4174_vm0, %v4173_v0  ;;  %3516 = vmatprep.mubr.msk.bf16.mxu1 %vm4174_vm0, %v4173_v0 }
 0x25f   :  { %3520 = vmatprep.subr.bf16.mxu0 %v4173_v0  ;;  %3526 = vmatprep.subr.bf16.mxu1 %v4173_v0  ;;  %v1199_v55 = vpop.f32.mrb[32].mxu0 }
 0x260   :  { %v1200_v18 = vadd.f32 %v3093_v53, %v1199_v55  ;;  %v3414_v19 = vpop.f32.mrb[33].mxu0 }
 0x261   :  { %v1202_v20 = vpop.f32.mrb[34].mxu0  ;;  %v1251_v21 = vpop.f32.mrb[32].mxu1 }
 0x262   :  { %v2002_v22 = vpack.c.bf16 %v1200_v18, %v1200_v18  ;;  %v3415_v23 = vpop.f32.mrb[35].mxu0  ;;  %v1252_v24 = vadd.f32 %v3094_v17, %v1251_v21  ;;  %v3422_v25 = vpop.f32.mrb[33].mxu1 }
 0x263   :  { %v1254_v26 = vpop.f32.mrb[34].mxu1 }
 0x264   :  { %3511 = vmatmul.mubr.msk.bf16.vlgmr.msra.gmra.mrb[60].mxu0 %vm1537_vm2, %v1527_v15  ;;  %3517 = vmatmul.mubr.msk.bf16.vlgmr.msra.gmra.mrb[60].mxu1 %vm1537_vm2, %v1528_v16  ;;  %v2015_v27 = vsel %vm2013_vm3, %v2002_v22, 0  ;;  %v2003_v28 = vpack.c.bf16 %v1252_v24, %v1252_v24  ;;  %v3423_v30 = vpop.f32.mrb[35].mxu1 }
 0x265   :  { %3522 = vmatprep.mubr.msk.bf16.mxu0 %vm4174_vm0, %v4173_v0  ;;  %3528 = vmatprep.mubr.msk.bf16.mxu1 %vm4174_vm0, %v4173_v0 }
 0x266   :  { %3521 = vmatpush3.bf16.msra.mxu0 %v2015_v27  ;;  %v2061_v32 = vsel %vm2013_vm3, %v2003_v28, 0 }
 0x267   :  { %3532 = vmatprep.subr.bf16.mxu0 %v4173_v0  ;;  %v4729_v33 = vpop.f32.mrb[36].mxu0  ;;  %3527 = vmatpush3.bf16.msra.mxu1 %v2061_v32 }
 0x268   :  { %v3430_v29 = vpop.f32.mrb[37].mxu0  ;;  %3538 = vmatprep.subr.bf16.mxu1 %v4173_v0 }
 0x269   :  { %v1306_v34 = vpop.f32.mrb[38].mxu0  ;;  %v4732_v35 = vpop.f32.mrb[36].mxu1 }
 0x26a   :  { %v3431_v36 = vpop.f32.mrb[39].mxu0  ;;  %v3438_v31 = vpop.f32.mrb[37].mxu1 }
 0x26b   :  { %v1358_v38 = vpop.f32.mrb[38].mxu1 }
 0x26c   :  { %v3439_v40 = vpop.f32.mrb[39].mxu1 }
 0x26f   :  { %v1395_v41 = vpop.f32.mrb[40].mxu0 }
 0x270   :  { %v4734_v42 = vadd.f32 %v3093_v53, %v1395_v41  ;;  %v3446_v43 = vpop.f32.mrb[41].mxu0 }
 0x271   :  { %v1398_v44 = vpop.f32.mrb[42].mxu0  ;;  %v1435_v46 = vpop.f32.mrb[40].mxu1 }
 0x272   :  { %v3447_v48 = vpop.f32.mrb[43].mxu0  ;;  %v4736_v49 = vadd.f32 %v3094_v17, %v1435_v46  ;;  %v3454_v37 = vpop.f32.mrb[41].mxu1  ;;  %v3095_v46 = vld [vmem:[#allocation13 + $0x2] ss:$0 sm:$0xff] }
 0x273   :  { %v1438_v50 = vpop.f32.mrb[42].mxu1 }
 0x274   :  { %v3455_v51 = vpop.f32.mrb[43].mxu1 }
 0x277   :  { %v4738_v52 = vpop.f32.mrb[44].mxu0 }
 0x278   :  { %v3462_v54 = vpop.f32.mrb[45].mxu0 }
 0x279   :  { %v1478_v56 = vpop.f32.mrb[46].mxu0  ;;  %v4740_v39 = vpop.f32.mrb[44].mxu1  ;;  %v1304_v54 = vadd.f32 %v3095_v46, %v4729_v33 }
 0x27a   :  { %v3463_v57 = vpop.f32.mrb[47].mxu0  ;;  %v3470_v58 = vpop.f32.mrb[45].mxu1 }
 0x27b   :  { %v1518_v59 = vpop.f32.mrb[46].mxu1  ;;  %v3096_v57 = vld [vmem:[#allocation13 + $0x3] ss:$0 sm:$0xff] }
 0x27c   :  { %v3471_v60 = vpop.f32.mrb[47].mxu1 }
 0x31f   :  { %v1578_v61 = vpop.f32.mrb[48].mxu0  ;;  %v1624_v62 = vpop.f32.mrb[48].mxu1 }
 0x320   :  { %v3476_v63 = vpop.f32.mrb[49].mxu0  ;;  %v1906_v1 = vsel %vm1537_vm2, %v1578_v61, -inf  ;;  %v3482_v2 = vpop.f32.mrb[49].mxu1  ;;  %v1909_v6 = vsel %vm1537_vm2, %v1624_v62, -inf }
 0x321   :  { %1907 = vmax.xlane.f32.xlu0 %v1906_v1  ;;  %v1581_v3 = vpop.f32.mrb[50].mxu0  ;;  %v1627_v4 = vpop.f32.mrb[50].mxu1  ;;  %v2004_v63 = vpack.c.bf16 %v1304_v54, %v1304_v54  ;;  %v2403_v54 = vld [vmem:[#allocation14] sm:$0xf] }
 0x322   :  { %v3477_v45 = vpop.f32.mrb[51].mxu0  ;;  %v3483_v5 = vpop.f32.mrb[51].mxu1 }
 0x323   :  { %v2107_v5 = vsel %vm2013_vm3, %v2004_v63, 0 }
 0x325   :  { %1910 = vmax.xlane.f32.xlu0 %v1909_v6 }
 0x327   :  { %v1670_v7 = vpop.f32.mrb[52].mxu0  ;;  %v1716_v8 = vpop.f32.mrb[52].mxu1 }
 0x328   :  { %v3488_v9 = vpop.f32.mrb[53].mxu0  ;;  %v1912_v47 = vsel %vm1537_vm2, %v1670_v7, -inf  ;;  %v3494_v10 = vpop.f32.mrb[53].mxu1  ;;  %v1915_v15 = vsel %vm1537_vm2, %v1716_v8, -inf }
 0x329   :  { %1913 = vmax.xlane.f32.xlu1 %v1912_v47  ;;  %v1673_v11 = vpop.f32.mrb[54].mxu0  ;;  %v1719_v12 = vpop.f32.mrb[54].mxu1 }
 0x32a   :  { %v3489_v13 = vpop.f32.mrb[55].mxu0  ;;  %v3495_v14 = vpop.f32.mrb[55].mxu1 }
 0x32b   :  { %v2006_v13 = vpack.c.bf16 %v4734_v42, %v4734_v42  ;;  %v2007_v42 = vpack.c.bf16 %v4736_v49, %v4736_v49 }
 0x32d   :  { %1916 = vmax.xlane.f32.xlu1 %v1915_v15 }
 0x32f   :  { %v1762_v16 = vpop.f32.mrb[56].mxu0  ;;  %v1808_v53 = vpop.f32.mrb[56].mxu1 }
 0x330   :  { %v3500_v55 = vpop.f32.mrb[57].mxu0  ;;  %v1918_v17 = vsel %vm1537_vm2, %v1762_v16, -inf  ;;  %v3506_v18 = vpop.f32.mrb[57].mxu1  ;;  %v1921_v19 = vsel %vm1537_vm2, %v1808_v53, -inf }
 0x331   :  { %1919 = vmax.xlane.f32.xlu0 %v1918_v17  ;;  %v1765_v20 = vpop.f32.mrb[58].mxu0  ;;  %v1811_v21 = vpop.f32.mrb[58].mxu1  ;;  %1922 = vmax.xlane.f32.xlu1 %v1921_v19  ;;  %v2199_v19 = vsel %vm2013_vm3, %v2006_v13, 0 }
 0x332   :  { %v3501_v22 = vpop.f32.mrb[59].mxu0  ;;  %v3507_v23 = vpop.f32.mrb[59].mxu1  ;;  %v1476_v20 = vadd.f32 %v3095_v46, %v4738_v52 }
 0x334   :  { %v2008_v52 = vpack.c.bf16 %v1476_v20, %v1476_v20 }
 0x337   :  { %v4748_v24 = vpop.f32.mrb[60].mxu0  ;;  %v4750_v25 = vpop.f32.mrb[60].mxu1 }
 0x338   :  { %v3512_v26 = vpop.f32.mrb[61].mxu0  ;;  %v1924_v27 = vsel %vm1537_vm2, %v4748_v24, -inf  ;;  %v3518_v28 = vpop.f32.mrb[61].mxu1  ;;  %v1927_v30 = vsel %vm1537_vm2, %v4750_v25, -inf }
 0x339   :  { %1925 = vmax.xlane.f32.xlu0 %v1924_v27  ;;  %v1857_v32 = vpop.f32.mrb[62].mxu0  ;;  %v1903_v29 = vpop.f32.mrb[62].mxu1  ;;  %1928 = vmax.xlane.f32.xlu1 %v1927_v30  ;;  %v1516_v28 = vadd.f32 %v3096_v57, %v4740_v39 }
 0x33a   :  { %v3513_v34 = vpop.f32.mrb[63].mxu0  ;;  %v3519_v36 = vpop.f32.mrb[63].mxu1 }
 0x33b   :  { %v2291_v36 = vsel %vm2013_vm3, %v2008_v52, 0 }
 0x3ae   :  { %v1908_v31 = vpop.xlane.xlu0 %1907 }
 0x3af   :  { %v1930_v38 = vsub.f32 %v1578_v61, %v1908_v31  ;;  %v1356_v61 = vadd.f32 %v3096_v57, %v4732_v35  ;;  %v2009_v31 = vpack.c.bf16 %v1516_v28, %v1516_v28  ;;  %v2404_v57 = vld [vmem:[#allocation14 + $0x4] sm:$0xf] }
 0x3b1   :  { %v1938_v40 = vpack.c.bf16 %v1930_v38, %v1930_v38  ;;  %v2005_v33 = vpack.c.bf16 %v1356_v61, %v1356_v61 }
 0x3b2   :  { %v1911_v41 = vpop.xlane.xlu0 %1910 }
 0x3b3   :  { %v1947_v43 = vmul.bf16 1069105081, %v1938_v40  ;;  %v1931_v44 = vsub.f32 %v1624_v62, %v1911_v41  ;;  %v2153_v12 = vsel %vm2013_vm3, %v2005_v33, 0 }
 0x3b5   :  { %3692 = vpow.bf16 %v1947_v43  ;;  %v1939_v48 = vpack.c.bf16 %v1931_v44, %v1931_v44  ;;  %v2337_v43 = vsel %vm2013_vm3, %v2009_v31, 0 }
 0x3b6   :  { %v1914_v37 = vpop.xlane.xlu1 %1913 }
 0x3b7   :  { %v1950_v50 = vmul.bf16 1069105081, %v1939_v48  ;;  %v1932_v51 = vsub.f32 %v1670_v7, %v1914_v37 }
 0x3b9   :  { %3694 = vpow.bf16 %v1950_v50  ;;  %v1940_v56 = vpack.c.bf16 %v1932_v51, %v1932_v51 }
 0x3ba   :  { %v1917_v58 = vpop.xlane.xlu1 %1916 }
 0x3bb   :  { %v1953_v59 = vmul.bf16 1069105081, %v1940_v56  ;;  %v1933_v60 = vsub.f32 %v1716_v8, %v1917_v58  ;;  %v2411_v56 = vsel %vm2013_vm3, %v2403_v54, 0  ;;  %v4812_v58 = vsel %vm2013_vm3, %v2404_v57, 0 }
 0x3bd   :  { %3696 = vpow.bf16 %v1953_v59  ;;  %v1941_v1 = vpack.c.bf16 %v1933_v60, %v1933_v60 }
 0x3be   :  { %v1920_v62 = vpop.xlane.xlu0 %1919  ;;  %v1923_v3 = vpop.xlane.xlu1 %1922 }
 0x3bf   :  { %v1956_v2 = vmul.bf16 1069105081, %v1941_v1  ;;  %v1934_v4 = vsub.f32 %v1762_v16, %v1920_v62  ;;  %v1935_v6 = vsub.f32 %v1808_v53, %v1923_v3 }
 0x3c0   :  { %v3693_v45 = vpop.eup %3692 }
 0x3c1   :  { %3698 = vpow.bf16 %v1956_v2  ;;  %v1942_v7 = vpack.c.bf16 %v1934_v4, %v1934_v4  ;;  %3523 = vmatmul.mubr.msk.bf16.vlgmr.msra.gmra.mrb[64].mxu0 %vm1537_vm2, %v3693_v45  ;;  %v1970_v9 = vunpack.c.l.bf16 %v3693_v45  ;;  %v1943_v8 = vpack.c.bf16 %v1935_v6, %v1935_v6  ;;  %v2405_v2 = vld [vmem:[#allocation14 + $0x8] sm:$0xf] }
 0x3c2   :  { %3533 = vmatpush3.bf16.msra.mxu0 %v2107_v5  ;;  %3534 = vmatprep.mubr.msk.bf16.mxu0 %vm4174_vm0, %v4173_v0 }
 0x3c3   :  { %v1959_v35 = vmul.bf16 1069105081, %v1942_v7  ;;  %v1978_v47 = vsel %vm1537_vm2, %v1970_v9, 0.0  ;;  %3544 = vmatprep.subr.bf16.mxu0 %v4173_v0  ;;  %v1962_v11 = vmul.bf16 1069105081, %v1943_v8  ;;  %v2503_v7 = vsel %vm2013_vm3, %v2405_v2, 0 }
 0x3c4   :  { %v3695_v10 = vpop.eup %3694  ;;  %1979 = vadd.xlane.f32.xlu0 %v1978_v47 }
 0x3c5   :  { %3700 = vpow.bf16 %v1959_v35  ;;  %3529 = vmatmul.mubr.msk.bf16.vlgmr.msra.gmra.mrb[64].mxu1 %vm1537_vm2, %v3695_v10  ;;  %v1971_v14 = vunpack.c.l.bf16 %v3695_v10  ;;  %v2406_v35 = vld [vmem:[#allocation14 + $0xc] sm:$0xf] }
 0x3c6   :  { %3702 = vpow.bf16 %v1962_v11  ;;  %3539 = vmatpush3.bf16.msra.mxu1 %v2153_v12  ;;  %v1926_v15 = vpop.xlane.xlu0 %1925  ;;  %3540 = vmatprep.mubr.msk.bf16.mxu1 %vm4174_vm0, %v4173_v0  ;;  %v1929_v16 = vpop.xlane.xlu1 %1928 }
 0x3c7   :  { %v1936_v53 = vsub.f32 %v4748_v24, %v1926_v15  ;;  %v1981_v55 = vsel %vm1537_vm2, %v1971_v14, 0.0  ;;  %3550 = vmatprep.subr.bf16.mxu1 %v4173_v0  ;;  %v1937_v18 = vsub.f32 %v4750_v25, %v1929_v16  ;;  %v2245_v25 = vsel %vm2013_vm3, %v2007_v42, 0 }
 0x3c8   :  { %v3697_v17 = vpop.eup %3696  ;;  %1982 = vadd.xlane.f32.xlu1 %v1981_v55  ;;  %v2549_v15 = vsel %vm2013_vm3, %v2406_v35, 0 }
 0x3c9   :  { %v1944_v21 = vpack.c.bf16 %v1936_v53, %v1936_v53  ;;  %3535 = vmatmul.mubr.msk.bf16.vlgmr.msra.gmra.mrb[68].mxu0 %vm1537_vm2, %v3697_v17  ;;  %v1972_v22 = vunpack.c.l.bf16 %v3697_v17  ;;  %v1945_v23 = vpack.c.bf16 %v1937_v18, %v1937_v18 }
 0x3ca   :  { %3545 = vmatpush3.bf16.msra.mxu0 %v2199_v19  ;;  %3546 = vmatprep.mubr.msk.bf16.mxu0 %vm4174_vm0, %v4173_v0 }
 0x3cb   :  { %v1965_v24 = vmul.bf16 1069105081, %v1944_v21  ;;  %v1984_v26 = vsel %vm1537_vm2, %v1972_v22, 0.0  ;;  %3556 = vmatprep.subr.bf16.mxu0 %v4173_v0  ;;  %v1968_v27 = vmul.bf16 1069105081, %v1945_v23 }
 0x3cc   :  { %v3699_v49 = vpop.eup %3698  ;;  %1985 = vadd.xlane.f32.xlu0 %v1984_v26 }
 0x3cd   :  { %3704 = vpow.bf16 %v1965_v24  ;;  %3541 = vmatmul.mubr.msk.bf16.vlgmr.msra.gmra.mrb[68].mxu1 %vm1537_vm2, %v3699_v49  ;;  %v1973_v30 = vunpack.c.l.bf16 %v3699_v49 }
 0x3ce   :  { %3706 = vpow.bf16 %v1968_v27  ;;  %3551 = vmatpush3.bf16.msra.mxu1 %v2245_v25  ;;  %3552 = vmatprep.mubr.msk.bf16.mxu1 %vm4174_vm0, %v4173_v0 }
 0x3cf   :  { %v1987_v32 = vsel %vm1537_vm2, %v1973_v30, 0.0  ;;  %3562 = vmatprep.subr.bf16.mxu1 %v4173_v0 }
 0x3d0   :  { %v3701_v29 = vpop.eup %3700  ;;  %1988 = vadd.xlane.f32.xlu1 %v1987_v32 }
 0x3d1   :  { %v3703_v34 = vpop.eup %3702  ;;  %3547 = vmatmul.mubr.msk.bf16.vlgmr.msra.gmra.mrb[72].mxu0 %vm1537_vm2, %v3701_v29  ;;  %v1974_v39 = vunpack.c.l.bf16 %v3701_v29 }
 0x3d2   :  { %3557 = vmatpush3.bf16.msra.mxu0 %v2291_v36  ;;  %v1975_v38 = vunpack.c.l.bf16 %v3703_v34  ;;  %3558 = vmatprep.mubr.msk.bf16.mxu0 %vm4174_vm0, %v4173_v0 }
 0x3d3   :  { %v1990_v40 = vsel %vm1537_vm2, %v1974_v39, 0.0  ;;  %3568 = vmatprep.subr.bf16.mxu0 %v4173_v0 }
 0x3d4   :  { %v1993_v41 = vsel %vm1537_vm2, %v1975_v38, 0.0  ;;  %1991 = vadd.xlane.f32.xlu0 %v1990_v40 }
 0x3d5   :  { %1994 = vadd.xlane.f32.xlu1 %v1993_v41  ;;  %3553 = vmatmul.mubr.msk.bf16.vlgmr.msra.gmra.mrb[72].mxu1 %vm1537_vm2, %v3703_v34 }
 0x3d6   :  { %3563 = vmatpush3.bf16.msra.mxu1 %v2337_v43  ;;  %3564 = vmatprep.mubr.msk.bf16.mxu1 %vm4174_vm0, %v4173_v0 }
 0x3d7   :  { %3574 = vmatprep.subr.bf16.mxu1 %v4173_v0 }
 0x3d8   :  { %v3705_v44 = vpop.eup %3704 }
 0x3d9   :  { %v3707_v46 = vpop.eup %3706  ;;  %3559 = vmatmul.mubr.msk.bf16.vlgmr.msra.gmra.mrb[76].mxu0 %vm1537_vm2, %v3705_v44  ;;  %v1976_v48 = vunpack.c.l.bf16 %v3705_v44 }
 0x3da   :  { %v1977_v37 = vunpack.c.l.bf16 %v3707_v46  ;;  %3570 = vmatprep.mubr.msk.bf16.mxu0 %vm4174_vm0, %v4173_v0  ;;  %3569 = vmatpush3.bf16.msra.mxu0 %v2411_v56 }
 0x3db   :  { %v1996_v50 = vsel %vm1537_vm2, %v1976_v48, 0.0  ;;  %3580 = vmatprep.subr.bf16.mxu0 %v4173_v0 }
 0x3dc   :  { %v1999_v51 = vsel %vm1537_vm2, %v1977_v37, 0.0  ;;  %1997 = vadd.xlane.f32.xlu0 %v1996_v50 }
 0x3dd   :  { %2000 = vadd.xlane.f32.xlu1 %v1999_v51  ;;  %3565 = vmatmul.mubr.msk.bf16.vlgmr.msra.gmra.mrb[76].mxu1 %vm1537_vm2, %v3707_v46 }
 0x3de   :  { %3576 = vmatprep.mubr.msk.bf16.mxu1 %vm4174_vm0, %v4173_v0  ;;  %3575 = vmatpush3.bf16.msra.mxu1 %v4812_v58 }
 0x3df   :  { %3586 = vmatprep.subr.bf16.mxu1 %v4173_v0 }
 0x451   :  { %v1980_v59 = vpop.xlane.xlu0 %1979 }
 0x452   :  { %3708 = vrcp.f32 %v1980_v59 }
 0x455   :  { %v1983_v60 = vpop.xlane.xlu1 %1982 }
 0x456   :  { %3710 = vrcp.f32 %v1983_v60 }
 0x459   :  { %v1986_v63 = vpop.xlane.xlu0 %1985 }
 0x45a   :  { %3712 = vrcp.f32 %v1986_v63 }
 0x45c   :  { %v3709_v1 = vpop.eup %3708 }
 0x45d   :  { %v1989_v61 = vpop.xlane.xlu1 %1988 }
 0x45e   :  { %3714 = vrcp.f32 %v1989_v61 }
 0x460   :  { %v3711_v9 = vpop.eup %3710 }
 0x461   :  { %v1992_v5 = vpop.xlane.xlu0 %1991 }
 0x462   :  { %3716 = vrcp.f32 %v1992_v5  ;;  %v1995_v12 = vpop.xlane.xlu1 %1994 }
 0x463   :  { %3718 = vrcp.f32 %v1995_v12  ;;  %v3137_v12 = vld [vmem:[#allocation16] ss:$0 sm:$0xff] }
 0x464   :  { %v3713_v16 = vpop.eup %3712 }
 0x468   :  { %v3715_v21 = vpop.eup %3714 }
 0x469   :  { %v1998_v18 = vpop.xlane.xlu0 %1997 }
 0x46a   :  { %3720 = vrcp.f32 %v1998_v18  ;;  %v2001_v49 = vpop.xlane.xlu1 %2000 }
 0x46b   :  { %3722 = vrcp.f32 %v2001_v49 }
 0x46c   :  { %v3717_v52 = vpop.eup %3716 }
 0x46d   :  { %v3719_v31 = vpop.eup %3718 }
 0x474   :  { %v3721_v46 = vpop.eup %3720 }
 0x475   :  { %v3723_v57 = vpop.eup %3722 }
 0x494   :  { %v2051_v62 = vpop.f32.mrb[64].mxu0 }
 0x495   :  { %v2387_v3 = vmul.f32 %v3709_v1, %v2051_v62  ;;  %v3524_v4 = vpop.f32.mrb[65].mxu0 }
 0x496   :  { %v2054_v45 = vpop.f32.mrb[66].mxu0 }
 0x497   :  { %v2395_v6 = vpack.c.bf16 %v2387_v3, %v2387_v3  ;;  %v3525_v33 = vpop.f32.mrb[67].mxu0 }
 0x498   :  { %v2097_v8 = vpop.f32.mrb[64].mxu1 }
 0x499   :  { %v2388_v47 = vmul.f32 %v3711_v9, %v2097_v8  ;;  %v3530_v10 = vpop.f32.mrb[65].mxu1  ;;  %3571 = vmatmul.mubr.msk.bf16.vlgmr.msra.gmra.mrb[80].mxu0 %vm1537_vm2, %v2395_v6 }
 0x49a   :  { %v2100_v11 = vpop.f32.mrb[66].mxu1  ;;  %3581 = vmatpush3.bf16.msra.mxu0 %v2503_v7  ;;  %3582 = vmatprep.mubr.msk.bf16.mxu0 %vm4174_vm0, %v4173_v0 }
 0x49b   :  { %v2396_v13 = vpack.c.bf16 %v2388_v47, %v2388_v47  ;;  %v3531_v14 = vpop.f32.mrb[67].mxu1  ;;  %3592 = vmatprep.subr.bf16.mxu0 %v4173_v0 }
 0x49c   :  { %v2143_v53 = vpop.f32.mrb[68].mxu0 }
 0x49d   :  { %v2389_v55 = vmul.f32 %v3713_v16, %v2143_v53  ;;  %v3536_v17 = vpop.f32.mrb[69].mxu0  ;;  %3577 = vmatmul.mubr.msk.bf16.vlgmr.msra.gmra.mrb[80].mxu1 %vm1537_vm2, %v2396_v13 }
 0x49e   :  { %v2146_v42 = vpop.f32.mrb[70].mxu0  ;;  %3587 = vmatpush3.bf16.msra.mxu1 %v2549_v15  ;;  %3588 = vmatprep.mubr.msk.bf16.mxu1 %vm4174_vm0, %v4173_v0 }
 0x49f   :  { %v2397_v19 = vpack.c.bf16 %v2389_v55, %v2389_v55  ;;  %v3537_v20 = vpop.f32.mrb[71].mxu0  ;;  %3598 = vmatprep.subr.bf16.mxu1 %v4173_v0  ;;  %v3732_v42 = vld [vmem:[#allocation2] sm:$0xff] }
 0x4a0   :  { %v2189_v22 = vpop.f32.mrb[68].mxu1 }
 0x4a1   :  { %v2390_v23 = vmul.f32 %v3715_v21, %v2189_v22  ;;  %v3542_v24 = vpop.f32.mrb[69].mxu1  ;;  %3583 = vmatmul.mubr.msk.bf16.vlgmr.msra.gmra.mrb[84].mxu0 %vm1537_vm2, %v2397_v19 }
 0x4a2   :  { %v2192_v26 = vpop.f32.mrb[70].mxu1  ;;  %3593 = vmatpush3.bf16.msra.mxu0 %v2411_v56  ;;  %3594 = vmatprep.mubr.msk.bf16.mxu0 %vm4174_vm0, %v4173_v0 }
 0x4a3   :  { %v2398_v25 = vpack.c.bf16 %v2390_v23, %v2390_v23  ;;  %v3543_v27 = vpop.f32.mrb[71].mxu1  ;;  %3604 = vmatprep.subr.bf16.mxu0 %v4173_v0 }
 0x4a4   :  { %v2235_v28 = vpop.f32.mrb[72].mxu0 }
 0x4a5   :  { %v2391_v30 = vmul.f32 %v3717_v52, %v2235_v28  ;;  %v3548_v32 = vpop.f32.mrb[73].mxu0  ;;  %3589 = vmatmul.mubr.msk.bf16.vlgmr.msra.gmra.mrb[84].mxu1 %vm1537_vm2, %v2398_v25 }
 0x4a6   :  { %v2238_v29 = vpop.f32.mrb[74].mxu0  ;;  %3599 = vmatpush3.bf16.msra.mxu1 %v4812_v58  ;;  %3600 = vmatprep.mubr.msk.bf16.mxu1 %vm4174_vm0, %v4173_v0 }
 0x4a7   :  { %v2399_v34 = vpack.c.bf16 %v2391_v30, %v2391_v30  ;;  %v3549_v36 = vpop.f32.mrb[75].mxu0  ;;  %3610 = vmatprep.subr.bf16.mxu1 %v4173_v0 }
 0x4a8   :  { %v2281_v39 = vpop.f32.mrb[72].mxu1 }
 0x4a9   :  { %v2392_v38 = vmul.f32 %v3719_v31, %v2281_v39  ;;  %v3554_v40 = vpop.f32.mrb[73].mxu1  ;;  %3595 = vmatmul.mubr.msk.bf16.vlgmr.msra.gmra.mrb[88].mxu0 %vm1537_vm2, %v2399_v34 }
 0x4aa   :  { %v2284_v41 = vpop.f32.mrb[74].mxu1  ;;  %3605 = vmatpush3.bf16.msra.mxu0 %v2503_v7  ;;  %3606 = vmatprep.mubr.msk.bf16.mxu0 %vm4174_vm0, %v4173_v0 }
 0x4ab   :  { %v2400_v43 = vpack.c.bf16 %v2392_v38, %v2392_v38  ;;  %v3555_v44 = vpop.f32.mrb[75].mxu1  ;;  %3616 = vmatprep.subr.bf16.mxu0 %v4173_v0  ;;  %v3733_v38 = vld [vmem:[#allocation2 + $0x8] sm:$0xff] }
 0x4ac   :  { %v2327_v48 = vpop.f32.mrb[76].mxu0 }
 0x4ad   :  { %v2393_v37 = vmul.f32 %v3721_v46, %v2327_v48  ;;  %v3560_v50 = vpop.f32.mrb[77].mxu0  ;;  %3601 = vmatmul.mubr.msk.bf16.vlgmr.msra.gmra.mrb[88].mxu1 %vm1537_vm2, %v2400_v43 }
 0x4ae   :  { %v2330_v51 = vpop.f32.mrb[78].mxu0  ;;  %3611 = vmatpush3.bf16.msra.mxu1 %v2549_v15  ;;  %3612 = vmatprep.mubr.msk.bf16.mxu1 %vm4174_vm0, %v4173_v0 }
 0x4af   :  { %v2401_v54 = vpack.c.bf16 %v2393_v37, %v2393_v37  ;;  %v3561_v56 = vpop.f32.mrb[79].mxu0  ;;  %3624 = vmatprep.subr.bf16.mxu1 %v4173_v0 }
 0x4b0   :  { %v2373_v58 = vpop.f32.mrb[76].mxu1 }
 0x4b1   :  { %v2394_v59 = vmul.f32 %v3723_v57, %v2373_v58  ;;  %v3566_v60 = vpop.f32.mrb[77].mxu1  ;;  %3607 = vmatmul.mubr.msk.bf16.vlgmr.msra.gmra.mrb[92].mxu0 %vm1537_vm2, %v2401_v54  ;;  %v3686_v58 = vld [vmem:[#allocation20] sm:$0xff]  }
 0x4b2   :  { %v2376_v63 = vpop.f32.mrb[78].mxu1  ;;  %3620 = vmatprep.mubr.msk.bf16.mxu0 %vm4174_vm0, %v4173_v0  ;;  %3617 = vmatpush3.bf16.msra.mxu0 %v3686_v58  ;;  %v3688_v60 = vld [vmem:[#allocation23] sm:$0xff]  }
 0x4b3   :  { %v2402_v61 = vpack.c.bf16 %v2394_v59, %v2394_v59  ;;  %v3567_v1 = vpop.f32.mrb[79].mxu1  ;;  %v3687_v59 = vld [vmem:[#allocation20 + $0x8] sm:$0xff]   ;;  %3618 = vmatprep.subr.bf16.mxu0 %v4173_v0  ;;  %v3689_v63 = vld [vmem:[#allocation23 + $0x8] sm:$0xff]   ;;  %v3151_v58 = vld [vmem:[#allocation28] ss:$0 sm:$0xff] }
 0x4b5   :  { %3613 = vmatmul.mubr.msk.bf16.vlgmr.msra.gmra.mrb[92].mxu1 %vm1537_vm2, %v2402_v61 }
 0x4b6   :  { %3632 = vmatprep.mubr.msk.bf16.mxu1 %vm4174_vm0, %v4173_v0  ;;  %3619 = vmatpush3.bf16.msra.mxu0 %v3687_v59 }
 0x4b7   :  { %3625 = vmatpush3.bf16.msra.mxu1 %v3688_v60 }
 0x4b8   :  { %3626 = vmatprep.subr.bf16.mxu1 %v4173_v0 }
 0x4bb   :  { %3627 = vmatpush3.bf16.msra.mxu1 %v3689_v63 }
 0x4bc   :  { %3628 = vmatprep.subr.bf16.mxu1 %v4173_v0 }
 0x56c   :  { %v2447_v62 = vpop.f32.mrb[80].mxu0 }
 0x56d   :  { %v3572_v2 = vpop.f32.mrb[81].mxu0 }
 0x56e   :  { %v2450_v3 = vpop.f32.mrb[82].mxu0 }
 0x56f   :  { %v3573_v4 = vpop.f32.mrb[83].mxu0 }
 0x570   :  { %v2493_v45 = vpop.f32.mrb[80].mxu1 }
 0x571   :  { %v2763_v5 = vadd.f32 %v2493_v45, %v2447_v62  ;;  %v3578_v6 = vpop.f32.mrb[81].mxu1 }
 0x572   :  { %v2496_v33 = vpop.f32.mrb[82].mxu1  ;;  %v3138_v6 = vld [vmem:[#allocation17] ss:$0 sm:$0xff] }
 0x573   :  { %v3579_v7 = vpop.f32.mrb[83].mxu1 }
 0x574   :  { %v2539_v9 = vpop.f32.mrb[84].mxu0 }
 0x575   :  { %v2765_v8 = vadd.f32 %v2763_v5, %v2539_v9  ;;  %v3584_v35 = vpop.f32.mrb[85].mxu0 }
 0x576   :  { %v2542_v47 = vpop.f32.mrb[86].mxu0 }
 0x577   :  { %v3585_v10 = vpop.f32.mrb[87].mxu0 }
 0x578   :  { %v2585_v11 = vpop.f32.mrb[84].mxu1 }
 0x579   :  { %v2767_v13 = vadd.f32 %v2765_v8, %v2585_v11  ;;  %v3590_v14 = vpop.f32.mrb[85].mxu1  ;;  %v3139_v8 = vld [vmem:[#allocation19] ss:$0 sm:$0xff] }
 0x57a   :  { %v2588_v15 = vpop.f32.mrb[86].mxu1  ;;  %v3140_v14 = vld [vmem:[#allocation22] ss:$0 sm:$0xff] }
 0x57b   :  { %v2776_v16 = vadd.f32 %v3137_v12, %v2767_v13  ;;  %v3591_v53 = vpop.f32.mrb[87].mxu1  ;;  %v3691_v13 = vld [vmem:[#allocation23 + $0x18] sm:$0xff]  }
 0x57c   :  { %v2628_v55 = vpop.f32.mrb[88].mxu0 }
 0x57d   :  { %v3596_v17 = vpop.f32.mrb[89].mxu0  ;;  %v2778_v18 = vadd.f32 %v3732_v42, %v2776_v16 }
 0x57e   :  { %v2631_v19 = vpop.f32.mrb[90].mxu0 }
 0x57f   :  { %v3597_v20 = vpop.f32.mrb[91].mxu0  ;;  %v2780_v21 = vsel %vm366_vm1, %v2778_v18, 0.0 }
 0x580   :  { %v2671_v22 = vpop.f32.mrb[88].mxu1  ;;  %2781 = vadd.xlane.f32.xlu0 %v2780_v21  ;;  %v3144_v21 = vld [vmem:[#allocation25] ss:$0 sm:$0xff] }
 0x581   :  { %v2764_v23 = vadd.f32 %v2671_v22, %v2628_v55  ;;  %v3602_v24 = vpop.f32.mrb[89].mxu1 }
 0x582   :  { %v2674_v26 = vpop.f32.mrb[90].mxu1 }
 0x583   :  { %v3603_v49 = vpop.f32.mrb[91].mxu1 }
 0x584   :  { %v2714_v25 = vpop.f32.mrb[92].mxu0 }
 0x585   :  { %v2766_v27 = vadd.f32 %v2764_v23, %v2714_v25  ;;  %v3608_v52 = vpop.f32.mrb[93].mxu0 }
 0x586   :  { %v2717_v28 = vpop.f32.mrb[94].mxu0 }
 0x587   :  { %v3609_v30 = vpop.f32.mrb[95].mxu0 }
 0x588   :  { %v2757_v32 = vpop.f32.mrb[92].mxu1 }
 0x589   :  { %v2768_v29 = vadd.f32 %v2766_v27, %v2757_v32  ;;  %v3614_v34 = vpop.f32.mrb[93].mxu1 }
 0x58a   :  { %v2760_v36 = vpop.f32.mrb[94].mxu1 }
 0x58b   :  { %v2777_v31 = vadd.f32 %v3137_v12, %v2768_v29  ;;  %v3615_v39 = vpop.f32.mrb[95].mxu1  ;;  %v3690_v12 = vld [vmem:[#allocation23 + $0x10] sm:$0xff]  }
 0x58c   :  { %3629 = vmatpush3.bf16.msra.mxu1 %v3690_v12 }
 0x58d   :  { %v2779_v40 = vadd.f32 %v3733_v38, %v2777_v31  ;;  %3630 = vmatprep.subr.bf16.mxu1 %v4173_v0 }
 0x58f   :  { %v2783_v41 = vsel %vm366_vm1, %v2779_v40, 0.0 }
 0x590   :  { %2784 = vadd.xlane.f32.xlu1 %v2783_v41  ;;  %3631 = vmatpush3.bf16.msra.mxu1 %v3691_v13 }
 0x60d   :  { %v2782_v43 = vpop.xlane.xlu0 %2781 }
 0x60e   :  { %v2787_v44 = vmul.f32 0.03125, %v2782_v43 }
 0x610   :  { %v2789_v46 = vsub.f32 %v2778_v18, %v2787_v44 }
 0x612   :  { %v2791_v48 = vmul.f32 %v2789_v46, %v2789_v46 }
 0x614   :  { %v2793_v37 = vsel %vm366_vm1, %v2791_v48, 0.0 }
 0x615   :  { %2794 = vadd.xlane.f32.xlu0 %v2793_v37 }
 0x61d   :  { %v2785_v50 = vpop.xlane.xlu1 %2784 }
 0x61e   :  { %v2788_v51 = vmul.f32 0.03125, %v2785_v50 }
 0x620   :  { %v2790_v54 = vsub.f32 %v2779_v40, %v2788_v51 }
 0x622   :  { %v2792_v56 = vmul.f32 %v2790_v54, %v2790_v54 }
 0x624   :  { %v2796_v57 = vsel %vm366_vm1, %v2792_v56, 0.0 }
 0x625   :  { %2797 = vadd.xlane.f32.xlu1 %v2796_v57 }
 0x6a2   :  { %v2795_v61 = vpop.xlane.xlu0 %2794 }
 0x6a3   :  { %v2799_v1 = vmul.f32 0.03125, %v2795_v61 }
 0x6a5   :  { %v2801_v62 = vadd.f32 1e-05, %v2799_v1 }
 0x6a7   :  { %3724 = vrsqrt.f32 %v2801_v62 }
 0x6b1   :  { %v3725_v45 = vpop.eup %3724 }
 0x6b2   :  { %v2798_v2 = vpop.xlane.xlu1 %2797  ;;  %v2805_v5 = vmul.f32 %v3725_v45, %v2789_v46 }
 0x6b3   :  { %v2800_v3 = vmul.f32 0.03125, %v2798_v2 }
 0x6b4   :  { %v2814_v7 = vmul.f32 %v3138_v6, %v2805_v5 }
 0x6b5   :  { %v2802_v4 = vadd.f32 1e-05, %v2800_v3 }
 0x6b6   :  { %v2823_v47 = vadd.f32 %v3139_v8, %v2814_v7 }
 0x6b7   :  { %3726 = vrsqrt.f32 %v2802_v4 }
 0x6c1   :  { %v3727_v33 = vpop.eup %3726 }
 0x6c2   :  { %v2806_v9 = vmul.f32 %v3727_v33, %v2790_v54  ;;  %v3150_v54 = vld [vmem:[#allocation26] ss:$0 sm:$0xff] }
 0x6c4   :  { %v2815_v35 = vmul.f32 %v3138_v6, %v2806_v9 }
 0x6c6   :  { %v2824_v10 = vadd.f32 %v3139_v8, %v2815_v35 }
 0x6c8   :  { %v2825_v11 = vpack.c.bf16 %v2824_v10, %v2823_v47 }
 0x6ca   :  { %3621 = vmatmul.mubr.msk.bf16.vlgmr.msra.gmra.mrb[96].mxu0 %vm366_vm1, %v2825_v11 }
 0x79d   :  { %v2886_v15 = vpop.f32.mrb[96].mxu0 }
 0x79e   :  { %v2887_v16 = vadd.f32 %v3140_v14, %v2886_v15  ;;  %v3622_v53 = vpop.f32.mrb[97].mxu0 }
 0x79f   :  { %v2889_v55 = vpop.f32.mrb[98].mxu0 }
 0x7a0   :  { %v2890_v17 = vadd.f32 %v3140_v14, %v2889_v55  ;;  %v3623_v42 = vpop.f32.mrb[99].mxu0  ;;  %v2893_v18 = vmax.f32 %v2887_v16, 0.0 }
 0x7a2   :  { %v2894_v19 = vmax.f32 %v2890_v17, 0.0 }
 0x7a4   :  { %v2895_v20 = vpack.c.bf16 %v2894_v19, %v2893_v18 }
 0x7a6   :  { %3633 = vmatmul.mubr.msk.bf16.vlgmr.msra.gmra.mrb[96].mxu1 %vm2935_vm4, %v2895_v20 }
 0x879   :  { %v2973_v22 = vpop.f32.mrb[96].mxu1 }
 0x87a   :  { %v2974_v23 = vadd.f32 %v3144_v21, %v2973_v22  ;;  %v3634_v24 = vpop.f32.mrb[97].mxu1 }
 0x87b   :  { %v2976_v26 = vpop.f32.mrb[98].mxu1 }
 0x87c   :  { %v2977_v0 = vadd.f32 %v3144_v21, %v2976_v26  ;;  %v3635_v49 = vpop.f32.mrb[99].mxu1  ;;  %v2980_v25 = vadd.f32 %v2974_v23, %v2823_v47 }
 0x87e   :  { %v2982_v27 = vsel %vm366_vm1, %v2980_v25, 0.0  ;;  %v2981_v52 = vadd.f32 %v2977_v0, %v2824_v10 }
 0x87f   :  { %2983 = vadd.xlane.f32.xlu0 %v2982_v27 }
 0x880   :  { %v2985_v28 = vsel %vm366_vm1, %v2981_v52, 0.0 }
 0x881   :  { %2986 = vadd.xlane.f32.xlu1 %v2985_v28 }
 0x90c   :  { %v2984_v30 = vpop.xlane.xlu0 %2983 }
 0x90d   :  { %v2988_v32 = vmul.f32 0.03125, %v2984_v30 }
 0x90e   :  { %v2987_v29 = vpop.xlane.xlu1 %2986 }
 0x90f   :  { %v2990_v34 = vsub.f32 %v2980_v25, %v2988_v32  ;;  %v2989_v36 = vmul.f32 0.03125, %v2987_v29 }
 0x911   :  { %v2991_v31 = vsub.f32 %v2981_v52, %v2989_v36  ;;  %v2992_v39 = vmul.f32 %v2990_v34, %v2990_v34 }
 0x913   :  { %v2994_v38 = vsel %vm366_vm1, %v2992_v39, 0.0  ;;  %v2993_v40 = vmul.f32 %v2991_v31, %v2991_v31 }
 0x914   :  { %2995 = vadd.xlane.f32.xlu0 %v2994_v38 }
 0x915   :  { %v2997_v41 = vsel %vm366_vm1, %v2993_v40, 0.0 }
 0x916   :  { %2998 = vadd.xlane.f32.xlu1 %v2997_v41 }
 0x9a1   :  { %v2996_v43 = vpop.xlane.xlu0 %2995 }
 0x9a2   :  { %v3000_v44 = vmul.f32 0.03125, %v2996_v43 }
 0x9a3   :  { %v2999_v46 = vpop.xlane.xlu1 %2998 }
 0x9a4   :  { %v3002_v48 = vadd.f32 1e-05, %v3000_v44  ;;  %v3001_v37 = vmul.f32 0.03125, %v2999_v46 }
 0x9a6   :  { %3728 = vrsqrt.f32 %v3002_v48  ;;  %v3003_v50 = vadd.f32 1e-05, %v3001_v37 }
 0x9a8   :  { %3730 = vrsqrt.f32 %v3003_v50 }
 0x9b0   :  { %v3729_v51 = vpop.eup %3728 }
 0x9b1   :  { %v3006_v56 = vmul.f32 %v3729_v51, %v2990_v34 }
 0x9b2   :  { %v3731_v57 = vpop.eup %3730 }
 0x9b3   :  { %v3007_v59 = vmul.f32 %v3731_v57, %v2991_v31  ;;  %v3015_v60 = vmul.f32 %v3150_v54, %v3006_v56 }
 0x9b5   :  { %v3016_v63 = vmul.f32 %v3150_v54, %v3007_v59  ;;  %v3024_v61 = vadd.f32 %v3151_v58, %v3015_v60 }
 0x9b7   :  { %v3025_v1 = vadd.f32 %v3151_v58, %v3016_v63  ;;  %3026 = vst.msk [vmem:[#allocation29] sm:$0xff] %vm366_vm1, %v3024_v61 }
 0x9b9   :  { %3027 = vst.msk [vmem:[#allocation29 + $0x8] sm:$0xff] %vm366_vm1, %v3025_v1 }
 0x9ba   :  { %4119 = shalt.err (!%p4116_p0)
}
 0x9bb   :  { %s4906_s9 = sld [smem:[#allocation42_spill]] }
 0x9c1   :  { %s4120_s17 = scalar_lea.hbm %s4906_s9, 256 }
 0x9c2   :  { %p4121_p1 = scmp.ne.s32.totalorder %s4906_s9, %s4120_s17  ;;  %p4124_p2 = scmp.lt.u32.totalorder %s4120_s17, %s4906_s9 }
 0x9c4   :  { %p4126_p3 = pnand %p4124_p2, %p4121_p1 }
 0x9c6   :  { %4129 = shalt.err (!%p4126_p3)
}
 0x9c7   :  { %3039 = dma.vmem_to_hbm [thread:$0]  %s3034_s10, 256, %s4906_s9, [#allocation4], %s4163_s15, %s4163_s15, %s4164_s5  }
 0x9c8   :  { %4148 = dma.done.wait [#allocation4], 256  }
 0x9c9   :  { %4149 = vsyncadd [#allocation4], 4294967040 }
 0x9ca   :  { %3043 = vsyncpa [#allocation3], 1 }
 0x9cb   :  { %3044 = vsyncpa [#allocation6], 1 }
 0x9cc   :  { %3045 = vsyncpa [#allocation9], 1 }
 0x9cd   :  { %3046 = vsyncpa [#allocation12], 1 }
 0x9ce   :  { %3047 = vsyncpa [#allocation15], 1 }
 0x9cf   :  { %3048 = vsyncpa [#allocation18], 1 }
 0x9d0   :  { %3049 = vsyncpa [#allocation21], 1 }
 0x9d1   :  { %3050 = vsyncpa [#allocation24], 1 }
 0x9d2   :  { %3051 = vsyncpa [#allocation27], 1 }
 0x9d3   :  { %3052 = vsyncpa [#allocation4], 1 }

</bundles_post_ra>
